<compile_context>
chip_gen: v5e
topology: v5e:2x2
jax: 0.10.0
libtpu: 0.0.40
codegen_flags: <defaults>
</compile_context>

<pallas_src>
import functools

import jax
import jax.numpy as jnp
from jax import lax
from jax.experimental import pallas as pl
from jax.experimental.pallas import tpu as pltpu


# ------------------------------ fused kernel --------------------------------

def _make_fused_kernel(n_layers, n_hidden):
    """Whole-forward kernel.  Ref order:

      inputs : slopes(SMEM (3+2L,)), eidx(E,2), col(1,E), batch(1,N),
               x(N,Fa), edge_attr(E,Fb), glob(B,G),
               node-enc [w1,w2,b(2,H)], edge-enc [...], glob-enc [...],
               edge_w1(L,3H,2H), edge_w2(L,2H,H),
               node_w1(L,2H,2H), node_w2(L,2H,H), layer_vecs(L,8,2H),
               out_w1(2H,H), out_w2(H,256), out_b1(1,H), out_b2(1,256)
      outputs: dos_pad(B,256) f32, x_out(N,H) f32
      scratch: cat_e(E,3H) f32, cat_n(N,2H) f32, cat_d(B,2H) f32
    """
    H = n_hidden
    f32 = jnp.float32
    bf16 = jnp.bfloat16

    def kernel(slopes, eidx_ref, col1e_ref, bat1n_ref,
               x_ref, e_ref, g_ref,
               xw1, xw2, xb,
               eew1, eew2, eeb,
               gw1, gw2, gb,
               ew1_ref, ew2_ref, nw1_ref, nw2_ref, vec_ref,
               ow1, ow2p, ob1, ob2p,
               dos_ref, xo_ref,
               cat_e, cat_n, cat_d):

        def dotf(a, b):
            # bf16 MXU operands, f32 accumulation.
            return jnp.dot(a.astype(bf16), b.astype(bf16),
                           preferred_element_type=f32)

        def prelu(h, a):
            return jnp.where(h > 0, h, a * h)

        def layernorm(h, g, b):
            mu = jnp.mean(h, axis=-1, keepdims=True)
            var = jnp.mean(jnp.square(h - mu), axis=-1, keepdims=True)
            return (h - mu) * lax.rsqrt(var + 1e-5) * g + b

        def enc(v_ref, w1, w2, b, a):
            b_ = b[...]                                   # (2, H) f32
            h = dotf(v_ref[...], w1[...]) + b_[0:1, :]
            h = prelu(h, a)
            return dotf(h, w2[...]) + b_[1:2, :]

        # ----------------------------- encoders -----------------------------
        x = enc(x_ref, xw1, xw2, xb, slopes[0])           # (N, H) f32
        e = enc(e_ref, eew1, eew2, eeb, slopes[1])        # (E, H) f32
        u = enc(g_ref, gw1, gw2, gb, slopes[2])           # (B, H) f32

        n_nodes, n_edges = x.shape[0], e.shape[0]
        n_graphs = dos_ref.shape[0]

        # one-hot gather / scatter / pooling matrices (bf16 — 0/1 are exact)
        eidx = eidx_ref[...]                              # (E, 2) int32
        row_e1 = eidx[:, 0:1]
        col_e1 = eidx[:, 1:2]

        def onehot(shape, axis, idx):
            it = lax.broadcasted_iota(jnp.int32, shape, axis)
            return jnp.where(it == idx, 1.0, 0.0).astype(bf16)

        g_row = onehot((n_edges, n_nodes), 1, row_e1)     # x[row]  = g_row @ x
        g_col = onehot((n_edges, n_nodes), 1, col_e1)     # x[col]  = g_col @ x
        s_col = onehot((n_nodes, n_edges), 0, col1e_ref[...])   # scatter by col
        p_bat = onehot((n_graphs, n_nodes), 0, bat1n_ref[...])  # graph pooling

        # -------------------------- message passing -------------------------
        for li in range(n_layers):
            a_e = slopes[3 + 2 * li]
            a_n = slopes[4 + 2 * li]
            v = vec_ref[li]                               # (8, 2H) f32
            e_b1, e_g, e_be = v[0:1, :], v[1:2, :], v[2:3, :]
            e_b2 = v[3:4, :H]
            n_b1, n_g, n_be = v[4:5, :], v[5:6, :], v[6:7, :]
            n_b2 = v[7:8, :H]

            # EdgeModel: edge_mlp(cat[x[row], x[col], edge_attr])
            xr = dotf(g_row, x)                           # (E, H)
            xc = dotf(g_col, x)                           # (E, H)
            cat_e[:, 0:H] = xr
            cat_e[:, H:2 * H] = xc
            cat_e[:, 2 * H:3 * H] = e
            h = dotf(cat_e[...], ew1_ref[li]) + e_b1      # one K=3H matmul
            h = prelu(layernorm(h, e_g, e_be), a_e)
            out_e = dotf(h, ew2_ref[li]) + e_b2           # (E, H)

            # NodeModel: node_mlp_2(cat[x, scatter_sum(out_e, col)])
            agg = dotf(s_col, out_e)                      # (N, H)
            cat_n[:, 0:H] = x
            cat_n[:, H:2 * H] = agg
            hn = dotf(cat_n[...], nw1_ref[li]) + n_b1     # one K=2H matmul
            hn = prelu(layernorm(hn, n_g, n_be), a_n)
            out_x = dotf(hn, nw2_ref[li]) + n_b2          # (N, H)

            # residual updates
            x = x + out_x
            e = e + out_e

        # ----------------------------- DOS head -----------------------------
        pooled = dotf(p_bat, x)                           # (B, H)
        cat_d[:, 0:H] = pooled
        cat_d[:, H:2 * H] = u
        hd = dotf(cat_d[...], ow1[...]) + ob1[...]
        hd = jnp.where(hd > 0, hd, 0.01 * hd)             # LeakyReLU(0.01)
        dos_ref[...] = dotf(hd, ow2p[...]) + ob2p[...]    # (B, 256) lane-dense
        xo_ref[...] = x

    return kernel


# --------------------------- parameter creation -----------------------------

def _linear(key, fan_in, fan_out, scale=0.1):
    kw, kb = jax.random.split(key)
    w = scale * jax.random.normal(kw, (fan_in, fan_out), jnp.float32)
    b = scale * jax.random.normal(kb, (fan_out,), jnp.float32)
    return w, b


def make_params(key, layers, n_atom_feats, n_bond_feats, n_glob_feats,
                n_hidden):
    keys = iter(jax.random.split(key, 64))
    prelu0 = jnp.array(0.25, jnp.float32)   # PyTorch PReLU default init

    def enc_mlp(fan_in):
        w1, b1 = _linear(next(keys), fan_in, n_hidden)
        w2, b2 = _linear(next(keys), n_hidden, n_hidden)
        return (w1, b1, prelu0, w2, b2)

    params = {
        "encoder": {
            "node": enc_mlp(n_atom_feats),
            "edge": enc_mlp(n_bond_feats),
            "glob": enc_mlp(n_glob_feats),
        },
        "layers": [],
    }

    def ln_mlp(fan_in, hid, fan_out):
        w1, b1 = _linear(next(keys), fan_in, hid)
        g = jnp.ones((hid,), jnp.float32)
        beta = jnp.zeros((hid,), jnp.float32)
        w2, b2 = _linear(next(keys), hid, fan_out)
        return (w1, b1, g, beta, prelu0, w2, b2)

    for _ in range(layers):
        params["layers"].append({
            "edge_mlp": ln_mlp(3 * n_hidden, 2 * n_hidden, n_hidden),
            "node_mlp": ln_mlp(2 * n_hidden, 2 * n_hidden, n_hidden),
        })

    w1, b1 = _linear(next(keys), 2 * n_hidden, n_hidden)
    w2, b2 = _linear(next(keys), n_hidden, 201)
    params["out"] = (w1, b1, w2, b2)
    return params


# ------------------------------- forward pass -------------------------------

@functools.partial(jax.jit, static_argnames=("num_graphs",))
def graphnetwork2_forward(params, x, edge_attr, glob, edge_index, batch,
                          num_graphs):
    enc = params["encoder"]
    H = enc["node"][3].shape[0]                 # n_hidden (w2 fan-in)
    G_feats = enc["glob"][0].shape[0]           # n_glob_feats (not hard-coded)
    n_layers = len(params["layers"])
    N, E = x.shape[0], edge_attr.shape[0]
    B = num_graphs

    f32, bf16 = jnp.float32, jnp.bfloat16

    row = edge_index[0].astype(jnp.int32)
    col = edge_index[1].astype(jnp.int32)
    bat = batch.astype(jnp.int32)

    # all PReLU slopes ride in one small SMEM vector
    slopes = jnp.stack(
        [enc["node"][2], enc["edge"][2], enc["glob"][2]]
        + [s for layer in params["layers"]
           for s in (layer["edge_mlp"][4], layer["node_mlp"][4])]
    ).astype(f32)

    inputs = [slopes,
              jnp.stack([row, col], axis=1),            # (E, 2) int32
              col.reshape(1, E),                        # (1, E) int32
              bat.reshape(1, N),                        # (1, N) int32
              x.astype(f32), edge_attr.astype(f32),
              glob.reshape(-1, G_feats).astype(f32)]

    def enc_pack(name):
        w1, b1, _a, w2, b2 = enc[name]
        return [w1.astype(bf16), w2.astype(bf16),
                jnp.stack([b1, b2]).astype(f32)]        # (2, H) f32

    inputs += enc_pack("node") + enc_pack("edge") + enc_pack("glob")

    # per-layer weights stacked into (L, ...) arrays; tiny vectors fused
    ew1 = jnp.stack([l["edge_mlp"][0] for l in params["layers"]]).astype(bf16)
    ew2 = jnp.stack([l["edge_mlp"][5] for l in params["layers"]]).astype(bf16)
    nw1 = jnp.stack([l["node_mlp"][0] for l in params["layers"]]).astype(bf16)
    nw2 = jnp.stack([l["node_mlp"][5] for l in params["layers"]]).astype(bf16)

    def pad2h(v):
        return jnp.pad(v, (0, 2 * H - v.shape[0]))

    vecs = jnp.stack([
        jnp.stack([l["edge_mlp"][1], l["edge_mlp"][2], l["edge_mlp"][3],
                   pad2h(l["edge_mlp"][6]),
                   l["node_mlp"][1], l["node_mlp"][2], l["node_mlp"][3],
                   pad2h(l["node_mlp"][6])])
        for l in params["layers"]]).astype(f32)          # (L, 8, 2H)

    inputs += [ew1, ew2, nw1, nw2, vecs]

    # output head — pad 201-wide DOS to 256 lanes for a lane-dense store
    w1, b1, w2, b2 = params["out"]
    DOS = w2.shape[1]                                    # 201
    DOS_PAD = ((DOS + 127) // 128) * 128                 # 256
    w2p = jnp.pad(w2, ((0, 0), (0, DOS_PAD - DOS))).astype(bf16)
    b2p = jnp.pad(b2, (0, DOS_PAD - DOS)).reshape(1, DOS_PAD).astype(f32)
    inputs += [w1.astype(bf16), w2p, b1.reshape(1, H).astype(f32), b2p]

    in_specs = ([pl.BlockSpec(memory_space=pltpu.MemorySpace.SMEM)]
                + [pl.BlockSpec(memory_space=pltpu.MemorySpace.VMEM)]
                * (len(inputs) - 1))
    out_specs = (pl.BlockSpec(memory_space=pltpu.MemorySpace.VMEM),
                 pl.BlockSpec(memory_space=pltpu.MemorySpace.VMEM))

    dos_pad, x_out = pl.pallas_call(
        _make_fused_kernel(n_layers, H),
        out_shape=(jax.ShapeDtypeStruct((B, DOS_PAD), f32),
                   jax.ShapeDtypeStruct((N, H), f32)),
        in_specs=in_specs,
        out_specs=out_specs,
        scratch_shapes=[pltpu.VMEM((E, 3 * H), f32),     # edge-MLP concat
                        pltpu.VMEM((N, 2 * H), f32),     # node-MLP concat
                        pltpu.VMEM((B, 2 * H), f32)],    # head concat
        compiler_params=pltpu.CompilerParams(
            vmem_limit_bytes=32 * 1024 * 1024),
    )(*inputs)

    return dos_pad[:, :DOS], x_out


# --------------------------- pure-JAX f32 reference ---------------------------

def _ref_mlp_prelu(x, w1, b1, a, w2, b2):
    h = x @ w1 + b1
    h = jnp.where(h > 0, h, a * h)
    return h @ w2 + b2


def _ref_mlp_ln_prelu(x, w1, b1, g, beta, a, w2, b2):
    h = x @ w1 + b1
    mu = jnp.mean(h, -1, keepdims=True)
    var = jnp.mean((h - mu) ** 2, -1, keepdims=True)
    h = (h - mu) / jnp.sqrt(var + 1e-5) * g + beta
    h = jnp.where(h > 0, h, a * h)
    return h @ w2 + b2


def reference_forward(params, x, edge_attr, glob, edge_index, batch,
                      num_graphs):
    enc = params["encoder"]
    x = _ref_mlp_prelu(x, *enc["node"])
    edge_attr = _ref_mlp_prelu(edge_attr, *enc["edge"])
    u = _ref_mlp_prelu(glob.reshape(-1, enc["glob"][0].shape[0]), *enc["glob"])
    row, col = edge_index[0], edge_index[1]
    for layer in params["layers"]:
        e_in = jnp.concatenate([x[row], x[col], edge_attr], 1)
        out_e = _ref_mlp_ln_prelu(e_in, *layer["edge_mlp"])
        agg = jax.ops.segment_sum(out_e, col, num_segments=x.shape[0])
        out_x = _ref_mlp_ln_prelu(jnp.concatenate([x, agg], 1),
                                  *layer["node_mlp"])
        x = x + out_x
        edge_attr = edge_attr + out_e
    dos_in = jnp.concatenate(
        [jax.ops.segment_sum(x, batch, num_segments=num_graphs), u], 1)
    w1, b1, w2, b2 = params["out"]
    h = dos_in @ w1 + b1
    h = jnp.where(h > 0, h, 0.01 * h)
    return h @ w2 + b2, x


# ----------------------------------- main ------------------------------------

if __name__ == "__main__":
    LAYERS = 2
    N_ATOM_FEATS = 200     # hits the node_encoder (non-prompt) branch
    N_BOND_FEATS = 8
    N_GLOB_FEATS = 2
    N_HIDDEN = 32
    N_NODES = 12
    N_EDGES = 24
    N_GRAPHS = 2

    key = jax.random.PRNGKey(0)
    kp, kx, ke, kg, ki = jax.random.split(key, 5)

    params = make_params(kp, LAYERS, N_ATOM_FEATS, N_BOND_FEATS,
                         N_GLOB_FEATS, N_HIDDEN)

    x = jax.random.normal(kx, (N_NODES, N_ATOM_FEATS), jnp.float32)
    edge_attr = jax.random.normal(ke, (N_EDGES, N_BOND_FEATS), jnp.float32)
    glob = jax.random.normal(kg, (N_GRAPHS, N_GLOB_FEATS), jnp.float32)
    edge_index = jax.random.randint(ki, (2, N_EDGES), 0, N_NODES, jnp.int32)
    batch = jnp.concatenate([
        jnp.zeros((N_NODES // 2,), jnp.int32),
        jnp.ones((N_NODES - N_NODES // 2,), jnp.int32)])

    dos, x_out = graphnetwork2_forward(params, x, edge_attr, glob, edge_index,
                                       batch, N_GRAPHS)
    jax.block_until_ready((dos, x_out))

    dos_ref, x_ref = reference_forward(params, x, edge_attr, glob, edge_index,
                                       batch, N_GRAPHS)
    assert dos.shape == (N_GRAPHS, 201) and x_out.shape == (N_NODES, N_HIDDEN)
    # Kernel uses bf16 MXU operands (f32 accumulation); tolerance vs the pure
    # f32 reference is loosened accordingly — real bugs (wrong index / missing
    # residual) would produce O(1) mismatches, far above this threshold.
    assert jnp.allclose(dos, dos_ref, atol=1e-1, rtol=1e-1)
    assert jnp.allclose(x_out, x_ref, atol=1e-1, rtol=1e-1)

    print("KERNEL_OK")
</pallas_src>

<mosaic_0001>
module attributes {stable_mosaic.version = 11 : i64} {
  func.func @kernel(%arg0: memref<7xf32, #tpu.memory_space<smem>>, %arg1: memref<24x2xi32, #tpu.memory_space<vmem>>, %arg2: memref<1x24xi32, #tpu.memory_space<vmem>>, %arg3: memref<1x12xi32, #tpu.memory_space<vmem>>, %arg4: memref<12x200xf32, #tpu.memory_space<vmem>>, %arg5: memref<24x8xf32, #tpu.memory_space<vmem>>, %arg6: memref<2x2xf32, #tpu.memory_space<vmem>>, %arg7: memref<200x32xbf16, #tpu.memory_space<vmem>>, %arg8: memref<32x32xbf16, #tpu.memory_space<vmem>>, %arg9: memref<2x32xf32, #tpu.memory_space<vmem>>, %arg10: memref<8x32xbf16, #tpu.memory_space<vmem>>, %arg11: memref<32x32xbf16, #tpu.memory_space<vmem>>, %arg12: memref<2x32xf32, #tpu.memory_space<vmem>>, %arg13: memref<2x32xbf16, #tpu.memory_space<vmem>>, %arg14: memref<32x32xbf16, #tpu.memory_space<vmem>>, %arg15: memref<2x32xf32, #tpu.memory_space<vmem>>, %arg16: memref<2x96x64xbf16, #tpu.memory_space<vmem>>, %arg17: memref<2x64x32xbf16, #tpu.memory_space<vmem>>, %arg18: memref<2x64x64xbf16, #tpu.memory_space<vmem>>, %arg19: memref<2x64x32xbf16, #tpu.memory_space<vmem>>, %arg20: memref<2x8x64xf32, #tpu.memory_space<vmem>>, %arg21: memref<64x32xbf16, #tpu.memory_space<vmem>>, %arg22: memref<32x256xbf16, #tpu.memory_space<vmem>>, %arg23: memref<1x32xf32, #tpu.memory_space<vmem>>, %arg24: memref<1x256xf32, #tpu.memory_space<vmem>>, %arg25: memref<2x256xf32, #tpu.memory_space<vmem>>, %arg26: memref<12x32xf32, #tpu.memory_space<vmem>>, %arg27: memref<24x96xf32, #tpu.memory_space<vmem>>, %arg28: memref<12x64xf32, #tpu.memory_space<vmem>>, %arg29: memref<2x64xf32, #tpu.memory_space<vmem>>) attributes {dimension_semantics = [], scalar_prefetch = 0 : i64, scratch_operands = 3 : i64, tpu.core_type = #tpu.core_type<tc>} {
    %c0 = arith.constant 0 : index
    %0 = memref.load %arg0[%c0] : memref<7xf32, #tpu.memory_space<smem>>
    %c0_0 = arith.constant 0 : index
    %c0_1 = arith.constant 0 : index
    %1 = vector.load %arg9[%c0_0, %c0_1] : memref<2x32xf32, #tpu.memory_space<vmem>>, vector<2x32xf32>
    %c0_2 = arith.constant 0 : index
    %c0_3 = arith.constant 0 : index
    %2 = vector.load %arg4[%c0_2, %c0_3] : memref<12x200xf32, #tpu.memory_space<vmem>>, vector<12x200xf32>
    %c0_4 = arith.constant 0 : index
    %c0_5 = arith.constant 0 : index
    %3 = vector.load %arg7[%c0_4, %c0_5] : memref<200x32xbf16, #tpu.memory_space<vmem>>, vector<200x32xbf16>
    %4 = arith.truncf %2 : vector<12x200xf32> to vector<12x200xbf16>
    %cst = arith.constant dense<0.000000e+00> : vector<12x32xf32>
    %5 = tpu.matmul %4, %3, %cst {dimension_numbers = #tpu.dot_dimension_numbers<[1], [0], [0], [1], [0, 0, 1, 1], [], []>} : vector<12x200xbf16>, vector<200x32xbf16>, vector<12x32xf32> -> vector<12x32xf32>
    %6 = vector.extract_strided_slice %1 {offsets = [0, 0], sizes = [1, 32], strides = [1, 1]} : vector<2x32xf32> to vector<1x32xf32>
    %7 = vector.broadcast %6 : vector<1x32xf32> to vector<12x32xf32>
    %8 = arith.addf %5, %7 : vector<12x32xf32>
    %cst_6 = arith.constant 0.000000e+00 : f32
    %9 = vector.broadcast %cst_6 : f32 to vector<12x32xf32>
    %10 = arith.cmpf ogt, %8, %9 : vector<12x32xf32>
    %11 = vector.broadcast %0 : f32 to vector<12x32xf32>
    %12 = arith.mulf %11, %8 : vector<12x32xf32>
    %13 = arith.select %10, %8, %12 : vector<12x32xi1>, vector<12x32xf32>
    %c0_7 = arith.constant 0 : index
    %c0_8 = arith.constant 0 : index
    %14 = vector.load %arg8[%c0_7, %c0_8] : memref<32x32xbf16, #tpu.memory_space<vmem>>, vector<32x32xbf16>
    %15 = arith.truncf %13 : vector<12x32xf32> to vector<12x32xbf16>
    %cst_9 = arith.constant dense<0.000000e+00> : vector<12x32xf32>
    %16 = tpu.matmul %15, %14, %cst_9 {dimension_numbers = #tpu.dot_dimension_numbers<[1], [0], [0], [1], [0, 0, 1, 1], [], []>} : vector<12x32xbf16>, vector<32x32xbf16>, vector<12x32xf32> -> vector<12x32xf32>
    %17 = vector.extract_strided_slice %1 {offsets = [1, 0], sizes = [1, 32], strides = [1, 1]} : vector<2x32xf32> to vector<1x32xf32>
    %18 = vector.broadcast %17 : vector<1x32xf32> to vector<12x32xf32>
    %19 = arith.addf %16, %18 : vector<12x32xf32>
    %c1 = arith.constant 1 : index
    %20 = memref.load %arg0[%c1] : memref<7xf32, #tpu.memory_space<smem>>
    %c0_10 = arith.constant 0 : index
    %c0_11 = arith.constant 0 : index
    %21 = vector.load %arg12[%c0_10, %c0_11] : memref<2x32xf32, #tpu.memory_space<vmem>>, vector<2x32xf32>
    %c0_12 = arith.constant 0 : index
    %c0_13 = arith.constant 0 : index
    %22 = vector.load %arg5[%c0_12, %c0_13] : memref<24x8xf32, #tpu.memory_space<vmem>>, vector<24x8xf32>
    %c0_14 = arith.constant 0 : index
    %c0_15 = arith.constant 0 : index
    %23 = vector.load %arg10[%c0_14, %c0_15] : memref<8x32xbf16, #tpu.memory_space<vmem>>, vector<8x32xbf16>
    %24 = arith.truncf %22 : vector<24x8xf32> to vector<24x8xbf16>
    %cst_16 = arith.constant dense<0.000000e+00> : vector<24x32xf32>
    %25 = tpu.matmul %24, %23, %cst_16 {dimension_numbers = #tpu.dot_dimension_numbers<[1], [0], [0], [1], [0, 0, 1, 1], [], []>} : vector<24x8xbf16>, vector<8x32xbf16>, vector<24x32xf32> -> vector<24x32xf32>
    %26 = vector.extract_strided_slice %21 {offsets = [0, 0], sizes = [1, 32], strides = [1, 1]} : vector<2x32xf32> to vector<1x32xf32>
    %27 = vector.broadcast %26 : vector<1x32xf32> to vector<24x32xf32>
    %28 = arith.addf %25, %27 : vector<24x32xf32>
    %cst_17 = arith.constant 0.000000e+00 : f32
    %29 = vector.broadcast %cst_17 : f32 to vector<24x32xf32>
    %30 = arith.cmpf ogt, %28, %29 : vector<24x32xf32>
    %31 = vector.broadcast %20 : f32 to vector<24x32xf32>
    %32 = arith.mulf %31, %28 : vector<24x32xf32>
    %33 = arith.select %30, %28, %32 : vector<24x32xi1>, vector<24x32xf32>
    %c0_18 = arith.constant 0 : index
    %c0_19 = arith.constant 0 : index
    %34 = vector.load %arg11[%c0_18, %c0_19] : memref<32x32xbf16, #tpu.memory_space<vmem>>, vector<32x32xbf16>
    %35 = arith.truncf %33 : vector<24x32xf32> to vector<24x32xbf16>
    %cst_20 = arith.constant dense<0.000000e+00> : vector<24x32xf32>
    %36 = tpu.matmul %35, %34, %cst_20 {dimension_numbers = #tpu.dot_dimension_numbers<[1], [0], [0], [1], [0, 0, 1, 1], [], []>} : vector<24x32xbf16>, vector<32x32xbf16>, vector<24x32xf32> -> vector<24x32xf32>
    %37 = vector.extract_strided_slice %21 {offsets = [1, 0], sizes = [1, 32], strides = [1, 1]} : vector<2x32xf32> to vector<1x32xf32>
    %38 = vector.broadcast %37 : vector<1x32xf32> to vector<24x32xf32>
    %39 = arith.addf %36, %38 : vector<24x32xf32>
    %c2 = arith.constant 2 : index
    %40 = memref.load %arg0[%c2] : memref<7xf32, #tpu.memory_space<smem>>
    %c0_21 = arith.constant 0 : index
    %c0_22 = arith.constant 0 : index
    %41 = vector.load %arg15[%c0_21, %c0_22] : memref<2x32xf32, #tpu.memory_space<vmem>>, vector<2x32xf32>
    %c0_23 = arith.constant 0 : index
    %c0_24 = arith.constant 0 : index
    %42 = vector.load %arg6[%c0_23, %c0_24] : memref<2x2xf32, #tpu.memory_space<vmem>>, vector<2x2xf32>
    %c0_25 = arith.constant 0 : index
    %c0_26 = arith.constant 0 : index
    %43 = vector.load %arg13[%c0_25, %c0_26] : memref<2x32xbf16, #tpu.memory_space<vmem>>, vector<2x32xbf16>
    %44 = arith.truncf %42 : vector<2x2xf32> to vector<2x2xbf16>
    %cst_27 = arith.constant dense<0.000000e+00> : vector<2x32xf32>
    %45 = tpu.matmul %44, %43, %cst_27 {dimension_numbers = #tpu.dot_dimension_numbers<[1], [0], [0], [1], [0, 0, 1, 1], [], []>} : vector<2x2xbf16>, vector<2x32xbf16>, vector<2x32xf32> -> vector<2x32xf32>
    %46 = vector.extract_strided_slice %41 {offsets = [0, 0], sizes = [1, 32], strides = [1, 1]} : vector<2x32xf32> to vector<1x32xf32>
    %47 = vector.broadcast %46 : vector<1x32xf32> to vector<2x32xf32>
    %48 = arith.addf %45, %47 : vector<2x32xf32>
    %cst_28 = arith.constant 0.000000e+00 : f32
    %49 = vector.broadcast %cst_28 : f32 to vector<2x32xf32>
    %50 = arith.cmpf ogt, %48, %49 : vector<2x32xf32>
    %51 = vector.broadcast %40 : f32 to vector<2x32xf32>
    %52 = arith.mulf %51, %48 : vector<2x32xf32>
    %53 = arith.select %50, %48, %52 : vector<2x32xi1>, vector<2x32xf32>
    %c0_29 = arith.constant 0 : index
    %c0_30 = arith.constant 0 : index
    %54 = vector.load %arg14[%c0_29, %c0_30] : memref<32x32xbf16, #tpu.memory_space<vmem>>, vector<32x32xbf16>
    %55 = arith.truncf %53 : vector<2x32xf32> to vector<2x32xbf16>
    %cst_31 = arith.constant dense<0.000000e+00> : vector<2x32xf32>
    %56 = tpu.matmul %55, %54, %cst_31 {dimension_numbers = #tpu.dot_dimension_numbers<[1], [0], [0], [1], [0, 0, 1, 1], [], []>} : vector<2x32xbf16>, vector<32x32xbf16>, vector<2x32xf32> -> vector<2x32xf32>
    %57 = vector.extract_strided_slice %41 {offsets = [1, 0], sizes = [1, 32], strides = [1, 1]} : vector<2x32xf32> to vector<1x32xf32>
    %58 = vector.broadcast %57 : vector<1x32xf32> to vector<2x32xf32>
    %59 = arith.addf %56, %58 : vector<2x32xf32>
    %c0_32 = arith.constant 0 : index
    %c0_33 = arith.constant 0 : index
    %60 = vector.load %arg1[%c0_32, %c0_33] : memref<24x2xi32, #tpu.memory_space<vmem>>, vector<24x2xi32>
    %61 = vector.extract_strided_slice %60 {offsets = [0, 0], sizes = [24, 1], strides = [1, 1]} : vector<24x2xi32> to vector<24x1xi32>
    %62 = vector.extract_strided_slice %60 {offsets = [0, 1], sizes = [24, 1], strides = [1, 1]} : vector<24x2xi32> to vector<24x1xi32>
    %63 = tpu.iota {dimensions = array<i32: 1>} : vector<24x12xi32>
    %64 = vector.broadcast %61 : vector<24x1xi32> to vector<24x12xi32>
    %65 = arith.cmpi eq, %63, %64 : vector<24x12xi32>
    %cst_34 = arith.constant 1.000000e+00 : f32
    %cst_35 = arith.constant 0.000000e+00 : f32
    %66 = vector.broadcast %cst_34 : f32 to vector<24x12xf32>
    %67 = vector.broadcast %cst_35 : f32 to vector<24x12xf32>
    %68 = arith.select %65, %66, %67 : vector<24x12xi1>, vector<24x12xf32>
    %69 = arith.truncf %68 : vector<24x12xf32> to vector<24x12xbf16>
    %70 = tpu.iota {dimensions = array<i32: 1>} : vector<24x12xi32>
    %71 = vector.broadcast %62 : vector<24x1xi32> to vector<24x12xi32>
    %72 = arith.cmpi eq, %70, %71 : vector<24x12xi32>
    %cst_36 = arith.constant 1.000000e+00 : f32
    %cst_37 = arith.constant 0.000000e+00 : f32
    %73 = vector.broadcast %cst_36 : f32 to vector<24x12xf32>
    %74 = vector.broadcast %cst_37 : f32 to vector<24x12xf32>
    %75 = arith.select %72, %73, %74 : vector<24x12xi1>, vector<24x12xf32>
    %76 = arith.truncf %75 : vector<24x12xf32> to vector<24x12xbf16>
    %c0_38 = arith.constant 0 : index
    %c0_39 = arith.constant 0 : index
    %77 = vector.load %arg2[%c0_38, %c0_39] : memref<1x24xi32, #tpu.memory_space<vmem>>, vector<1x24xi32>
    %78 = tpu.iota {dimensions = array<i32: 0>} : vector<12x24xi32>
    %79 = vector.broadcast %77 : vector<1x24xi32> to vector<12x24xi32>
    %80 = arith.cmpi eq, %78, %79 : vector<12x24xi32>
    %cst_40 = arith.constant 1.000000e+00 : f32
    %cst_41 = arith.constant 0.000000e+00 : f32
    %81 = vector.broadcast %cst_40 : f32 to vector<12x24xf32>
    %82 = vector.broadcast %cst_41 : f32 to vector<12x24xf32>
    %83 = arith.select %80, %81, %82 : vector<12x24xi1>, vector<12x24xf32>
    %84 = arith.truncf %83 : vector<12x24xf32> to vector<12x24xbf16>
    %c0_42 = arith.constant 0 : index
    %c0_43 = arith.constant 0 : index
    %85 = vector.load %arg3[%c0_42, %c0_43] : memref<1x12xi32, #tpu.memory_space<vmem>>, vector<1x12xi32>
    %86 = tpu.iota {dimensions = array<i32: 0>} : vector<2x12xi32>
    %87 = vector.broadcast %85 : vector<1x12xi32> to vector<2x12xi32>
    %88 = arith.cmpi eq, %86, %87 : vector<2x12xi32>
    %cst_44 = arith.constant 1.000000e+00 : f32
    %cst_45 = arith.constant 0.000000e+00 : f32
    %89 = vector.broadcast %cst_44 : f32 to vector<2x12xf32>
    %90 = vector.broadcast %cst_45 : f32 to vector<2x12xf32>
    %91 = arith.select %88, %89, %90 : vector<2x12xi1>, vector<2x12xf32>
    %92 = arith.truncf %91 : vector<2x12xf32> to vector<2x12xbf16>
    %c3 = arith.constant 3 : index
    %93 = memref.load %arg0[%c3] : memref<7xf32, #tpu.memory_space<smem>>
    %c4 = arith.constant 4 : index
    %94 = memref.load %arg0[%c4] : memref<7xf32, #tpu.memory_space<smem>>
    %c0_46 = arith.constant 0 : index
    %c0_47 = arith.constant 0 : index
    %c0_48 = arith.constant 0 : index
    %95 = vector.load %arg20[%c0_46, %c0_47, %c0_48] : memref<2x8x64xf32, #tpu.memory_space<vmem>>, vector<1x8x64xf32>
    %96 = vector.shape_cast %95 : vector<1x8x64xf32> to vector<8x64xf32>
    %97 = vector.extract_strided_slice %96 {offsets = [0, 0], sizes = [1, 64], strides = [1, 1]} : vector<8x64xf32> to vector<1x64xf32>
    %98 = vector.extract_strided_slice %96 {offsets = [1, 0], sizes = [1, 64], strides = [1, 1]} : vector<8x64xf32> to vector<1x64xf32>
    %99 = vector.extract_strided_slice %96 {offsets = [2, 0], sizes = [1, 64], strides = [1, 1]} : vector<8x64xf32> to vector<1x64xf32>
    %100 = vector.extract_strided_slice %96 {offsets = [3, 0], sizes = [1, 32], strides = [1, 1]} : vector<8x64xf32> to vector<1x32xf32>
    %101 = vector.extract_strided_slice %96 {offsets = [4, 0], sizes = [1, 64], strides = [1, 1]} : vector<8x64xf32> to vector<1x64xf32>
    %102 = vector.extract_strided_slice %96 {offsets = [5, 0], sizes = [1, 64], strides = [1, 1]} : vector<8x64xf32> to vector<1x64xf32>
    %103 = vector.extract_strided_slice %96 {offsets = [6, 0], sizes = [1, 64], strides = [1, 1]} : vector<8x64xf32> to vector<1x64xf32>
    %104 = vector.extract_strided_slice %96 {offsets = [7, 0], sizes = [1, 32], strides = [1, 1]} : vector<8x64xf32> to vector<1x32xf32>
    %105 = arith.truncf %19 : vector<12x32xf32> to vector<12x32xbf16>
    %cst_49 = arith.constant dense<0.000000e+00> : vector<24x32xf32>
    %106 = tpu.matmul %69, %105, %cst_49 {dimension_numbers = #tpu.dot_dimension_numbers<[1], [0], [0], [1], [0, 0, 1, 1], [], []>} : vector<24x12xbf16>, vector<12x32xbf16>, vector<24x32xf32> -> vector<24x32xf32>
    %107 = arith.truncf %19 : vector<12x32xf32> to vector<12x32xbf16>
    %cst_50 = arith.constant dense<0.000000e+00> : vector<24x32xf32>
    %108 = tpu.matmul %76, %107, %cst_50 {dimension_numbers = #tpu.dot_dimension_numbers<[1], [0], [0], [1], [0, 0, 1, 1], [], []>} : vector<24x12xbf16>, vector<12x32xbf16>, vector<24x32xf32> -> vector<24x32xf32>
    %c0_51 = arith.constant 0 : index
    %c0_52 = arith.constant 0 : index
    %109 = vector.load %arg27[%c0_51, %c0_52] : memref<24x96xf32, #tpu.memory_space<vmem>>, vector<24x32xf32>
    tpu.vector_store %arg27[%c0_51, %c0_52], %106 {strides = array<i32>} : memref<24x96xf32, #tpu.memory_space<vmem>>, vector<24x32xf32>,
    %c0_53 = arith.constant 0 : index
    %c32 = arith.constant 32 : index
    %110 = vector.load %arg27[%c0_53, %c32] : memref<24x96xf32, #tpu.memory_space<vmem>>, vector<24x32xf32>
    tpu.vector_store %arg27[%c0_53, %c32], %108 {strides = array<i32>} : memref<24x96xf32, #tpu.memory_space<vmem>>, vector<24x32xf32>,
    %c0_54 = arith.constant 0 : index
    %c64 = arith.constant 64 : index
    %111 = vector.load %arg27[%c0_54, %c64] : memref<24x96xf32, #tpu.memory_space<vmem>>, vector<24x32xf32>
    tpu.vector_store %arg27[%c0_54, %c64], %39 {strides = array<i32>} : memref<24x96xf32, #tpu.memory_space<vmem>>, vector<24x32xf32>,
    %c0_55 = arith.constant 0 : index
    %c0_56 = arith.constant 0 : index
    %112 = vector.load %arg27[%c0_55, %c0_56] : memref<24x96xf32, #tpu.memory_space<vmem>>, vector<24x96xf32>
    %c0_57 = arith.constant 0 : index
    %c0_58 = arith.constant 0 : index
    %c0_59 = arith.constant 0 : index
    %113 = vector.load %arg16[%c0_57, %c0_58, %c0_59] : memref<2x96x64xbf16, #tpu.memory_space<vmem>>, vector<1x96x64xbf16>
    %114 = vector.shape_cast %113 : vector<1x96x64xbf16> to vector<96x64xbf16>
    %115 = arith.truncf %112 : vector<24x96xf32> to vector<24x96xbf16>
    %cst_60 = arith.constant dense<0.000000e+00> : vector<24x64xf32>
    %116 = tpu.matmul %115, %114, %cst_60 {dimension_numbers = #tpu.dot_dimension_numbers<[1], [0], [0], [1], [0, 0, 1, 1], [], []>} : vector<24x96xbf16>, vector<96x64xbf16>, vector<24x64xf32> -> vector<24x64xf32>
    %117 = vector.broadcast %97 : vector<1x64xf32> to vector<24x64xf32>
    %118 = arith.addf %116, %117 : vector<24x64xf32>
    %cst_61 = arith.constant dense<0.000000e+00> : vector<24xf32>
    %119 = vector.multi_reduction <add>, %118, %cst_61 [1] : vector<24x64xf32> to vector<24xf32>
    %120 = vector.shape_cast %119 : vector<24xf32> to vector<24x1xf32>
    %cst_62 = arith.constant 6.400000e+01 : f32
    %121 = vector.broadcast %cst_62 : f32 to vector<24x1xf32>
    %122 = arith.divf %120, %121 : vector<24x1xf32>
    %123 = vector.broadcast %122 : vector<24x1xf32> to vector<24x64xf32>
    %124 = arith.subf %118, %123 : vector<24x64xf32>
    %125 = arith.mulf %124, %124 : vector<24x64xf32>
    %cst_63 = arith.constant dense<0.000000e+00> : vector<24xf32>
    %126 = vector.multi_reduction <add>, %125, %cst_63 [1] : vector<24x64xf32> to vector<24xf32>
    %127 = vector.shape_cast %126 : vector<24xf32> to vector<24x1xf32>
    %cst_64 = arith.constant 6.400000e+01 : f32
    %128 = vector.broadcast %cst_64 : f32 to vector<24x1xf32>
    %129 = arith.divf %127, %128 : vector<24x1xf32>
    %130 = vector.broadcast %122 : vector<24x1xf32> to vector<24x64xf32>
    %131 = arith.subf %118, %130 : vector<24x64xf32>
    %cst_65 = arith.constant 9.99999974E-6 : f32
    %132 = vector.broadcast %cst_65 : f32 to vector<24x1xf32>
    %133 = arith.addf %129, %132 : vector<24x1xf32>
    %134 = math.rsqrt %133 : vector<24x1xf32>
    %135 = vector.broadcast %134 : vector<24x1xf32> to vector<24x64xf32>
    %136 = arith.mulf %131, %135 : vector<24x64xf32>
    %137 = vector.broadcast %98 : vector<1x64xf32> to vector<24x64xf32>
    %138 = arith.mulf %136, %137 : vector<24x64xf32>
    %139 = vector.broadcast %99 : vector<1x64xf32> to vector<24x64xf32>
    %140 = arith.addf %138, %139 : vector<24x64xf32>
    %cst_66 = arith.constant 0.000000e+00 : f32
    %141 = vector.broadcast %cst_66 : f32 to vector<24x64xf32>
    %142 = arith.cmpf ogt, %140, %141 : vector<24x64xf32>
    %143 = vector.broadcast %93 : f32 to vector<24x64xf32>
    %144 = arith.mulf %143, %140 : vector<24x64xf32>
    %145 = arith.select %142, %140, %144 : vector<24x64xi1>, vector<24x64xf32>
    %c0_67 = arith.constant 0 : index
    %c0_68 = arith.constant 0 : index
    %c0_69 = arith.constant 0 : index
    %146 = vector.load %arg17[%c0_67, %c0_68, %c0_69] : memref<2x64x32xbf16, #tpu.memory_space<vmem>>, vector<1x64x32xbf16>
    %147 = vector.shape_cast %146 : vector<1x64x32xbf16> to vector<64x32xbf16>
    %148 = arith.truncf %145 : vector<24x64xf32> to vector<24x64xbf16>
    %cst_70 = arith.constant dense<0.000000e+00> : vector<24x32xf32>
    %149 = tpu.matmul %148, %147, %cst_70 {dimension_numbers = #tpu.dot_dimension_numbers<[1], [0], [0], [1], [0, 0, 1, 1], [], []>} : vector<24x64xbf16>, vector<64x32xbf16>, vector<24x32xf32> -> vector<24x32xf32>
    %150 = vector.broadcast %100 : vector<1x32xf32> to vector<24x32xf32>
    %151 = arith.addf %149, %150 : vector<24x32xf32>
    %152 = arith.truncf %151 : vector<24x32xf32> to vector<24x32xbf16>
    %cst_71 = arith.constant dense<0.000000e+00> : vector<12x32xf32>
    %153 = tpu.matmul %84, %152, %cst_71 {dimension_numbers = #tpu.dot_dimension_numbers<[1], [0], [0], [1], [0, 0, 1, 1], [], []>} : vector<12x24xbf16>, vector<24x32xbf16>, vector<12x32xf32> -> vector<12x32xf32>
    %c0_72 = arith.constant 0 : index
    %c0_73 = arith.constant 0 : index
    %154 = vector.load %arg28[%c0_72, %c0_73] : memref<12x64xf32, #tpu.memory_space<vmem>>, vector<12x32xf32>
    tpu.vector_store %arg28[%c0_72, %c0_73], %19 {strides = array<i32>} : memref<12x64xf32, #tpu.memory_space<vmem>>, vector<12x32xf32>,
    %c0_74 = arith.constant 0 : index
    %c32_75 = arith.constant 32 : index
    %155 = vector.load %arg28[%c0_74, %c32_75] : memref<12x64xf32, #tpu.memory_space<vmem>>, vector<12x32xf32>
    tpu.vector_store %arg28[%c0_74, %c32_75], %153 {strides = array<i32>} : memref<12x64xf32, #tpu.memory_space<vmem>>, vector<12x32xf32>,
    %c0_76 = arith.constant 0 : index
    %c0_77 = arith.constant 0 : index
    %156 = vector.load %arg28[%c0_76, %c0_77] : memref<12x64xf32, #tpu.memory_space<vmem>>, vector<12x64xf32>
    %c0_78 = arith.constant 0 : index
    %c0_79 = arith.constant 0 : index
    %c0_80 = arith.constant 0 : index
    %157 = vector.load %arg18[%c0_78, %c0_79, %c0_80] : memref<2x64x64xbf16, #tpu.memory_space<vmem>>, vector<1x64x64xbf16>
    %158 = vector.shape_cast %157 : vector<1x64x64xbf16> to vector<64x64xbf16>
    %159 = arith.truncf %156 : vector<12x64xf32> to vector<12x64xbf16>
    %cst_81 = arith.constant dense<0.000000e+00> : vector<12x64xf32>
    %160 = tpu.matmul %159, %158, %cst_81 {dimension_numbers = #tpu.dot_dimension_numbers<[1], [0], [0], [1], [0, 0, 1, 1], [], []>} : vector<12x64xbf16>, vector<64x64xbf16>, vector<12x64xf32> -> vector<12x64xf32>
    %161 = vector.broadcast %101 : vector<1x64xf32> to vector<12x64xf32>
    %162 = arith.addf %160, %161 : vector<12x64xf32>
    %cst_82 = arith.constant dense<0.000000e+00> : vector<12xf32>
    %163 = vector.multi_reduction <add>, %162, %cst_82 [1] : vector<12x64xf32> to vector<12xf32>
    %164 = vector.shape_cast %163 : vector<12xf32> to vector<12x1xf32>
    %cst_83 = arith.constant 6.400000e+01 : f32
    %165 = vector.broadcast %cst_83 : f32 to vector<12x1xf32>
    %166 = arith.divf %164, %165 : vector<12x1xf32>
    %167 = vector.broadcast %166 : vector<12x1xf32> to vector<12x64xf32>
    %168 = arith.subf %162, %167 : vector<12x64xf32>
    %169 = arith.mulf %168, %168 : vector<12x64xf32>
    %cst_84 = arith.constant dense<0.000000e+00> : vector<12xf32>
    %170 = vector.multi_reduction <add>, %169, %cst_84 [1] : vector<12x64xf32> to vector<12xf32>
    %171 = vector.shape_cast %170 : vector<12xf32> to vector<12x1xf32>
    %cst_85 = arith.constant 6.400000e+01 : f32
    %172 = vector.broadcast %cst_85 : f32 to vector<12x1xf32>
    %173 = arith.divf %171, %172 : vector<12x1xf32>
    %174 = vector.broadcast %166 : vector<12x1xf32> to vector<12x64xf32>
    %175 = arith.subf %162, %174 : vector<12x64xf32>
    %cst_86 = arith.constant 9.99999974E-6 : f32
    %176 = vector.broadcast %cst_86 : f32 to vector<12x1xf32>
    %177 = arith.addf %173, %176 : vector<12x1xf32>
    %178 = math.rsqrt %177 : vector<12x1xf32>
    %179 = vector.broadcast %178 : vector<12x1xf32> to vector<12x64xf32>
    %180 = arith.mulf %175, %179 : vector<12x64xf32>
    %181 = vector.broadcast %102 : vector<1x64xf32> to vector<12x64xf32>
    %182 = arith.mulf %180, %181 : vector<12x64xf32>
    %183 = vector.broadcast %103 : vector<1x64xf32> to vector<12x64xf32>
    %184 = arith.addf %182, %183 : vector<12x64xf32>
    %cst_87 = arith.constant 0.000000e+00 : f32
    %185 = vector.broadcast %cst_87 : f32 to vector<12x64xf32>
    %186 = arith.cmpf ogt, %184, %185 : vector<12x64xf32>
    %187 = vector.broadcast %94 : f32 to vector<12x64xf32>
    %188 = arith.mulf %187, %184 : vector<12x64xf32>
    %189 = arith.select %186, %184, %188 : vector<12x64xi1>, vector<12x64xf32>
    %c0_88 = arith.constant 0 : index
    %c0_89 = arith.constant 0 : index
    %c0_90 = arith.constant 0 : index
    %190 = vector.load %arg19[%c0_88, %c0_89, %c0_90] : memref<2x64x32xbf16, #tpu.memory_space<vmem>>, vector<1x64x32xbf16>
    %191 = vector.shape_cast %190 : vector<1x64x32xbf16> to vector<64x32xbf16>
    %192 = arith.truncf %189 : vector<12x64xf32> to vector<12x64xbf16>
    %cst_91 = arith.constant dense<0.000000e+00> : vector<12x32xf32>
    %193 = tpu.matmul %192, %191, %cst_91 {dimension_numbers = #tpu.dot_dimension_numbers<[1], [0], [0], [1], [0, 0, 1, 1], [], []>} : vector<12x64xbf16>, vector<64x32xbf16>, vector<12x32xf32> -> vector<12x32xf32>
    %194 = vector.broadcast %104 : vector<1x32xf32> to vector<12x32xf32>
    %195 = arith.addf %193, %194 : vector<12x32xf32>
    %196 = arith.addf %19, %195 : vector<12x32xf32>
    %197 = arith.addf %39, %151 : vector<24x32xf32>
    %c5 = arith.constant 5 : index
    %198 = memref.load %arg0[%c5] : memref<7xf32, #tpu.memory_space<smem>>
    %c6 = arith.constant 6 : index
    %199 = memref.load %arg0[%c6] : memref<7xf32, #tpu.memory_space<smem>>
    %c1_92 = arith.constant 1 : index
    %c0_93 = arith.constant 0 : index
    %c0_94 = arith.constant 0 : index
    %200 = vector.load %arg20[%c1_92, %c0_93, %c0_94] : memref<2x8x64xf32, #tpu.memory_space<vmem>>, vector<1x8x64xf32>
    %201 = vector.shape_cast %200 : vector<1x8x64xf32> to vector<8x64xf32>
    %202 = vector.extract_strided_slice %201 {offsets = [0, 0], sizes = [1, 64], strides = [1, 1]} : vector<8x64xf32> to vector<1x64xf32>
    %203 = vector.extract_strided_slice %201 {offsets = [1, 0], sizes = [1, 64], strides = [1, 1]} : vector<8x64xf32> to vector<1x64xf32>
    %204 = vector.extract_strided_slice %201 {offsets = [2, 0], sizes = [1, 64], strides = [1, 1]} : vector<8x64xf32> to vector<1x64xf32>
    %205 = vector.extract_strided_slice %201 {offsets = [3, 0], sizes = [1, 32], strides = [1, 1]} : vector<8x64xf32> to vector<1x32xf32>
    %206 = vector.extract_strided_slice %201 {offsets = [4, 0], sizes = [1, 64], strides = [1, 1]} : vector<8x64xf32> to vector<1x64xf32>
    %207 = vector.extract_strided_slice %201 {offsets = [5, 0], sizes = [1, 64], strides = [1, 1]} : vector<8x64xf32> to vector<1x64xf32>
    %208 = vector.extract_strided_slice %201 {offsets = [6, 0], sizes = [1, 64], strides = [1, 1]} : vector<8x64xf32> to vector<1x64xf32>
    %209 = vector.extract_strided_slice %201 {offsets = [7, 0], sizes = [1, 32], strides = [1, 1]} : vector<8x64xf32> to vector<1x32xf32>
    %210 = arith.truncf %196 : vector<12x32xf32> to vector<12x32xbf16>
    %cst_95 = arith.constant dense<0.000000e+00> : vector<24x32xf32>
    %211 = tpu.matmul %69, %210, %cst_95 {dimension_numbers = #tpu.dot_dimension_numbers<[1], [0], [0], [1], [0, 0, 1, 1], [], []>} : vector<24x12xbf16>, vector<12x32xbf16>, vector<24x32xf32> -> vector<24x32xf32>
    %212 = arith.truncf %196 : vector<12x32xf32> to vector<12x32xbf16>
    %cst_96 = arith.constant dense<0.000000e+00> : vector<24x32xf32>
    %213 = tpu.matmul %76, %212, %cst_96 {dimension_numbers = #tpu.dot_dimension_numbers<[1], [0], [0], [1], [0, 0, 1, 1], [], []>} : vector<24x12xbf16>, vector<12x32xbf16>, vector<24x32xf32> -> vector<24x32xf32>
    %c0_97 = arith.constant 0 : index
    %c0_98 = arith.constant 0 : index
    %214 = vector.load %arg27[%c0_97, %c0_98] : memref<24x96xf32, #tpu.memory_space<vmem>>, vector<24x32xf32>
    tpu.vector_store %arg27[%c0_97, %c0_98], %211 {strides = array<i32>} : memref<24x96xf32, #tpu.memory_space<vmem>>, vector<24x32xf32>,
    %c0_99 = arith.constant 0 : index
    %c32_100 = arith.constant 32 : index
    %215 = vector.load %arg27[%c0_99, %c32_100] : memref<24x96xf32, #tpu.memory_space<vmem>>, vector<24x32xf32>
    tpu.vector_store %arg27[%c0_99, %c32_100], %213 {strides = array<i32>} : memref<24x96xf32, #tpu.memory_space<vmem>>, vector<24x32xf32>,
    %c0_101 = arith.constant 0 : index
    %c64_102 = arith.constant 64 : index
    %216 = vector.load %arg27[%c0_101, %c64_102] : memref<24x96xf32, #tpu.memory_space<vmem>>, vector<24x32xf32>
    tpu.vector_store %arg27[%c0_101, %c64_102], %197 {strides = array<i32>} : memref<24x96xf32, #tpu.memory_space<vmem>>, vector<24x32xf32>,
    %c0_103 = arith.constant 0 : index
    %c0_104 = arith.constant 0 : index
    %217 = vector.load %arg27[%c0_103, %c0_104] : memref<24x96xf32, #tpu.memory_space<vmem>>, vector<24x96xf32>
    %c1_105 = arith.constant 1 : index
    %c0_106 = arith.constant 0 : index
    %c0_107 = arith.constant 0 : index
    %218 = vector.load %arg16[%c1_105, %c0_106, %c0_107] : memref<2x96x64xbf16, #tpu.memory_space<vmem>>, vector<1x96x64xbf16>
    %219 = vector.shape_cast %218 : vector<1x96x64xbf16> to vector<96x64xbf16>
    %220 = arith.truncf %217 : vector<24x96xf32> to vector<24x96xbf16>
    %cst_108 = arith.constant dense<0.000000e+00> : vector<24x64xf32>
    %221 = tpu.matmul %220, %219, %cst_108 {dimension_numbers = #tpu.dot_dimension_numbers<[1], [0], [0], [1], [0, 0, 1, 1], [], []>} : vector<24x96xbf16>, vector<96x64xbf16>, vector<24x64xf32> -> vector<24x64xf32>
    %222 = vector.broadcast %202 : vector<1x64xf32> to vector<24x64xf32>
    %223 = arith.addf %221, %222 : vector<24x64xf32>
    %cst_109 = arith.constant dense<0.000000e+00> : vector<24xf32>
    %224 = vector.multi_reduction <add>, %223, %cst_109 [1] : vector<24x64xf32> to vector<24xf32>
    %225 = vector.shape_cast %224 : vector<24xf32> to vector<24x1xf32>
    %cst_110 = arith.constant 6.400000e+01 : f32
    %226 = vector.broadcast %cst_110 : f32 to vector<24x1xf32>
    %227 = arith.divf %225, %226 : vector<24x1xf32>
    %228 = vector.broadcast %227 : vector<24x1xf32> to vector<24x64xf32>
    %229 = arith.subf %223, %228 : vector<24x64xf32>
    %230 = arith.mulf %229, %229 : vector<24x64xf32>
    %cst_111 = arith.constant dense<0.000000e+00> : vector<24xf32>
    %231 = vector.multi_reduction <add>, %230, %cst_111 [1] : vector<24x64xf32> to vector<24xf32>
    %232 = vector.shape_cast %231 : vector<24xf32> to vector<24x1xf32>
    %cst_112 = arith.constant 6.400000e+01 : f32
    %233 = vector.broadcast %cst_112 : f32 to vector<24x1xf32>
    %234 = arith.divf %232, %233 : vector<24x1xf32>
    %235 = vector.broadcast %227 : vector<24x1xf32> to vector<24x64xf32>
    %236 = arith.subf %223, %235 : vector<24x64xf32>
    %cst_113 = arith.constant 9.99999974E-6 : f32
    %237 = vector.broadcast %cst_113 : f32 to vector<24x1xf32>
    %238 = arith.addf %234, %237 : vector<24x1xf32>
    %239 = math.rsqrt %238 : vector<24x1xf32>
    %240 = vector.broadcast %239 : vector<24x1xf32> to vector<24x64xf32>
    %241 = arith.mulf %236, %240 : vector<24x64xf32>
    %242 = vector.broadcast %203 : vector<1x64xf32> to vector<24x64xf32>
    %243 = arith.mulf %241, %242 : vector<24x64xf32>
    %244 = vector.broadcast %204 : vector<1x64xf32> to vector<24x64xf32>
    %245 = arith.addf %243, %244 : vector<24x64xf32>
    %cst_114 = arith.constant 0.000000e+00 : f32
    %246 = vector.broadcast %cst_114 : f32 to vector<24x64xf32>
    %247 = arith.cmpf ogt, %245, %246 : vector<24x64xf32>
    %248 = vector.broadcast %198 : f32 to vector<24x64xf32>
    %249 = arith.mulf %248, %245 : vector<24x64xf32>
    %250 = arith.select %247, %245, %249 : vector<24x64xi1>, vector<24x64xf32>
    %c1_115 = arith.constant 1 : index
    %c0_116 = arith.constant 0 : index
    %c0_117 = arith.constant 0 : index
    %251 = vector.load %arg17[%c1_115, %c0_116, %c0_117] : memref<2x64x32xbf16, #tpu.memory_space<vmem>>, vector<1x64x32xbf16>
    %252 = vector.shape_cast %251 : vector<1x64x32xbf16> to vector<64x32xbf16>
    %253 = arith.truncf %250 : vector<24x64xf32> to vector<24x64xbf16>
    %cst_118 = arith.constant dense<0.000000e+00> : vector<24x32xf32>
    %254 = tpu.matmul %253, %252, %cst_118 {dimension_numbers = #tpu.dot_dimension_numbers<[1], [0], [0], [1], [0, 0, 1, 1], [], []>} : vector<24x64xbf16>, vector<64x32xbf16>, vector<24x32xf32> -> vector<24x32xf32>
    %255 = vector.broadcast %205 : vector<1x32xf32> to vector<24x32xf32>
    %256 = arith.addf %254, %255 : vector<24x32xf32>
    %257 = arith.truncf %256 : vector<24x32xf32> to vector<24x32xbf16>
    %cst_119 = arith.constant dense<0.000000e+00> : vector<12x32xf32>
    %258 = tpu.matmul %84, %257, %cst_119 {dimension_numbers = #tpu.dot_dimension_numbers<[1], [0], [0], [1], [0, 0, 1, 1], [], []>} : vector<12x24xbf16>, vector<24x32xbf16>, vector<12x32xf32> -> vector<12x32xf32>
    %c0_120 = arith.constant 0 : index
    %c0_121 = arith.constant 0 : index
    %259 = vector.load %arg28[%c0_120, %c0_121] : memref<12x64xf32, #tpu.memory_space<vmem>>, vector<12x32xf32>
    tpu.vector_store %arg28[%c0_120, %c0_121], %196 {strides = array<i32>} : memref<12x64xf32, #tpu.memory_space<vmem>>, vector<12x32xf32>,
    %c0_122 = arith.constant 0 : index
    %c32_123 = arith.constant 32 : index
    %260 = vector.load %arg28[%c0_122, %c32_123] : memref<12x64xf32, #tpu.memory_space<vmem>>, vector<12x32xf32>
    tpu.vector_store %arg28[%c0_122, %c32_123], %258 {strides = array<i32>} : memref<12x64xf32, #tpu.memory_space<vmem>>, vector<12x32xf32>,
    %c0_124 = arith.constant 0 : index
    %c0_125 = arith.constant 0 : index
    %261 = vector.load %arg28[%c0_124, %c0_125] : memref<12x64xf32, #tpu.memory_space<vmem>>, vector<12x64xf32>
    %c1_126 = arith.constant 1 : index
    %c0_127 = arith.constant 0 : index
    %c0_128 = arith.constant 0 : index
    %262 = vector.load %arg18[%c1_126, %c0_127, %c0_128] : memref<2x64x64xbf16, #tpu.memory_space<vmem>>, vector<1x64x64xbf16>
    %263 = vector.shape_cast %262 : vector<1x64x64xbf16> to vector<64x64xbf16>
    %264 = arith.truncf %261 : vector<12x64xf32> to vector<12x64xbf16>
    %cst_129 = arith.constant dense<0.000000e+00> : vector<12x64xf32>
    %265 = tpu.matmul %264, %263, %cst_129 {dimension_numbers = #tpu.dot_dimension_numbers<[1], [0], [0], [1], [0, 0, 1, 1], [], []>} : vector<12x64xbf16>, vector<64x64xbf16>, vector<12x64xf32> -> vector<12x64xf32>
    %266 = vector.broadcast %206 : vector<1x64xf32> to vector<12x64xf32>
    %267 = arith.addf %265, %266 : vector<12x64xf32>
    %cst_130 = arith.constant dense<0.000000e+00> : vector<12xf32>
    %268 = vector.multi_reduction <add>, %267, %cst_130 [1] : vector<12x64xf32> to vector<12xf32>
    %269 = vector.shape_cast %268 : vector<12xf32> to vector<12x1xf32>
    %cst_131 = arith.constant 6.400000e+01 : f32
    %270 = vector.broadcast %cst_131 : f32 to vector<12x1xf32>
    %271 = arith.divf %269, %270 : vector<12x1xf32>
    %272 = vector.broadcast %271 : vector<12x1xf32> to vector<12x64xf32>
    %273 = arith.subf %267, %272 : vector<12x64xf32>
    %274 = arith.mulf %273, %273 : vector<12x64xf32>
    %cst_132 = arith.constant dense<0.000000e+00> : vector<12xf32>
    %275 = vector.multi_reduction <add>, %274, %cst_132 [1] : vector<12x64xf32> to vector<12xf32>
    %276 = vector.shape_cast %275 : vector<12xf32> to vector<12x1xf32>
    %cst_133 = arith.constant 6.400000e+01 : f32
    %277 = vector.broadcast %cst_133 : f32 to vector<12x1xf32>
    %278 = arith.divf %276, %277 : vector<12x1xf32>
    %279 = vector.broadcast %271 : vector<12x1xf32> to vector<12x64xf32>
    %280 = arith.subf %267, %279 : vector<12x64xf32>
    %cst_134 = arith.constant 9.99999974E-6 : f32
    %281 = vector.broadcast %cst_134 : f32 to vector<12x1xf32>
    %282 = arith.addf %278, %281 : vector<12x1xf32>
    %283 = math.rsqrt %282 : vector<12x1xf32>
    %284 = vector.broadcast %283 : vector<12x1xf32> to vector<12x64xf32>
    %285 = arith.mulf %280, %284 : vector<12x64xf32>
    %286 = vector.broadcast %207 : vector<1x64xf32> to vector<12x64xf32>
    %287 = arith.mulf %285, %286 : vector<12x64xf32>
    %288 = vector.broadcast %208 : vector<1x64xf32> to vector<12x64xf32>
    %289 = arith.addf %287, %288 : vector<12x64xf32>
    %cst_135 = arith.constant 0.000000e+00 : f32
    %290 = vector.broadcast %cst_135 : f32 to vector<12x64xf32>
    %291 = arith.cmpf ogt, %289, %290 : vector<12x64xf32>
    %292 = vector.broadcast %199 : f32 to vector<12x64xf32>
    %293 = arith.mulf %292, %289 : vector<12x64xf32>
    %294 = arith.select %291, %289, %293 : vector<12x64xi1>, vector<12x64xf32>
    %c1_136 = arith.constant 1 : index
    %c0_137 = arith.constant 0 : index
    %c0_138 = arith.constant 0 : index
    %295 = vector.load %arg19[%c1_136, %c0_137, %c0_138] : memref<2x64x32xbf16, #tpu.memory_space<vmem>>, vector<1x64x32xbf16>
    %296 = vector.shape_cast %295 : vector<1x64x32xbf16> to vector<64x32xbf16>
    %297 = arith.truncf %294 : vector<12x64xf32> to vector<12x64xbf16>
    %cst_139 = arith.constant dense<0.000000e+00> : vector<12x32xf32>
    %298 = tpu.matmul %297, %296, %cst_139 {dimension_numbers = #tpu.dot_dimension_numbers<[1], [0], [0], [1], [0, 0, 1, 1], [], []>} : vector<12x64xbf16>, vector<64x32xbf16>, vector<12x32xf32> -> vector<12x32xf32>
    %299 = vector.broadcast %209 : vector<1x32xf32> to vector<12x32xf32>
    %300 = arith.addf %298, %299 : vector<12x32xf32>
    %301 = arith.addf %196, %300 : vector<12x32xf32>
    %302 = arith.truncf %301 : vector<12x32xf32> to vector<12x32xbf16>
    %cst_140 = arith.constant dense<0.000000e+00> : vector<2x32xf32>
    %303 = tpu.matmul %92, %302, %cst_140 {dimension_numbers = #tpu.dot_dimension_numbers<[1], [0], [0], [1], [0, 0, 1, 1], [], []>} : vector<2x12xbf16>, vector<12x32xbf16>, vector<2x32xf32> -> vector<2x32xf32>
    %c0_141 = arith.constant 0 : index
    %c0_142 = arith.constant 0 : index
    %304 = vector.load %arg29[%c0_141, %c0_142] : memref<2x64xf32, #tpu.memory_space<vmem>>, vector<2x32xf32>
    tpu.vector_store %arg29[%c0_141, %c0_142], %303 {strides = array<i32>} : memref<2x64xf32, #tpu.memory_space<vmem>>, vector<2x32xf32>,
    %c0_143 = arith.constant 0 : index
    %c32_144 = arith.constant 32 : index
    %305 = vector.load %arg29[%c0_143, %c32_144] : memref<2x64xf32, #tpu.memory_space<vmem>>, vector<2x32xf32>
    tpu.vector_store %arg29[%c0_143, %c32_144], %59 {strides = array<i32>} : memref<2x64xf32, #tpu.memory_space<vmem>>, vector<2x32xf32>,
    %c0_145 = arith.constant 0 : index
    %c0_146 = arith.constant 0 : index
    %306 = vector.load %arg29[%c0_145, %c0_146] : memref<2x64xf32, #tpu.memory_space<vmem>>, vector<2x64xf32>
    %c0_147 = arith.constant 0 : index
    %c0_148 = arith.constant 0 : index
    %307 = vector.load %arg21[%c0_147, %c0_148] : memref<64x32xbf16, #tpu.memory_space<vmem>>, vector<64x32xbf16>
    %308 = arith.truncf %306 : vector<2x64xf32> to vector<2x64xbf16>
    %cst_149 = arith.constant dense<0.000000e+00> : vector<2x32xf32>
    %309 = tpu.matmul %308, %307, %cst_149 {dimension_numbers = #tpu.dot_dimension_numbers<[1], [0], [0], [1], [0, 0, 1, 1], [], []>} : vector<2x64xbf16>, vector<64x32xbf16>, vector<2x32xf32> -> vector<2x32xf32>
    %c0_150 = arith.constant 0 : index
    %c0_151 = arith.constant 0 : index
    %310 = vector.load %arg23[%c0_150, %c0_151] : memref<1x32xf32, #tpu.memory_space<vmem>>, vector<1x32xf32>
    %311 = vector.broadcast %310 : vector<1x32xf32> to vector<2x32xf32>
    %312 = arith.addf %309, %311 : vector<2x32xf32>
    %cst_152 = arith.constant 0.000000e+00 : f32
    %313 = vector.broadcast %cst_152 : f32 to vector<2x32xf32>
    %314 = arith.cmpf ogt, %312, %313 : vector<2x32xf32>
    %cst_153 = arith.constant 0.00999999977 : f32
    %315 = vector.broadcast %cst_153 : f32 to vector<2x32xf32>
    %316 = arith.mulf %315, %312 : vector<2x32xf32>
    %317 = arith.select %314, %312, %316 : vector<2x32xi1>, vector<2x32xf32>
    %c0_154 = arith.constant 0 : index
    %c0_155 = arith.constant 0 : index
    %318 = vector.load %arg22[%c0_154, %c0_155] : memref<32x256xbf16, #tpu.memory_space<vmem>>, vector<32x256xbf16>
    %319 = arith.truncf %317 : vector<2x32xf32> to vector<2x32xbf16>
    %cst_156 = arith.constant dense<0.000000e+00> : vector<2x256xf32>
    %320 = tpu.matmul %319, %318, %cst_156 {dimension_numbers = #tpu.dot_dimension_numbers<[1], [0], [0], [1], [0, 0, 1, 1], [], []>} : vector<2x32xbf16>, vector<32x256xbf16>, vector<2x256xf32> -> vector<2x256xf32>
    %c0_157 = arith.constant 0 : index
    %c0_158 = arith.constant 0 : index
    %321 = vector.load %arg24[%c0_157, %c0_158] : memref<1x256xf32, #tpu.memory_space<vmem>>, vector<1x256xf32>
    %322 = vector.broadcast %321 : vector<1x256xf32> to vector<2x256xf32>
    %323 = arith.addf %320, %322 : vector<2x256xf32>
    %c0_159 = arith.constant 0 : index
    %c0_160 = arith.constant 0 : index
    %324 = vector.load %arg25[%c0_159, %c0_160] : memref<2x256xf32, #tpu.memory_space<vmem>>, vector<2x256xf32>
    tpu.vector_store %arg25[%c0_159, %c0_160], %323 {strides = array<i32>} : memref<2x256xf32, #tpu.memory_space<vmem>>, vector<2x256xf32>,
    %c0_161 = arith.constant 0 : index
    %c0_162 = arith.constant 0 : index
    %325 = vector.load %arg26[%c0_161, %c0_162] : memref<12x32xf32, #tpu.memory_space<vmem>>, vector<12x32xf32>
    tpu.vector_store %arg26[%c0_161, %c0_162], %301 {strides = array<i32>} : memref<12x32xf32, #tpu.memory_space<vmem>>, vector<12x32xf32>,
    return
  }
}

</mosaic_0001>

<bundles_post_ra>
// kernel: graphnetwork2_forward.1
= control target key start
LH: loop header
LB: loop body
LE: loop exit
PB: predicated region body
PF: predicated region fallthrough
CT: control target
= control target key end

     0   :  { %s2871_s0 = inlined_call_operand.vmem [shape: f32[7], index: 0, kind: input, shape index: {}]   ;;  %s2872_s1 = inlined_call_operand.vmem [shape: s32[24,2], index: 1, kind: input, shape index: {}]   ;;  %s2873_s2 = inlined_call_operand.vmem [shape: s32[1,24], index: 2, kind: input, shape index: {}]   ;;  %s2874_s3 = inlined_call_operand.vmem [shape: s32[1,12], index: 3, kind: input, shape index: {}]   ;;  %s2875_s4 = inlined_call_operand.vmem [shape: f32[12,200], index: 4, kind: input, shape index: {}]   ;;  %s2876_s5 = inlined_call_operand.vmem [shape: f32[24,8], index: 5, kind: input, shape index: {}]   ;;  %s2877_s6 = inlined_call_operand.vmem [shape: f32[2,2], index: 6, kind: input, shape index: {}]   ;;  %s2878_s7 = inlined_call_operand.vmem [shape: bf16[200,32], index: 7, kind: input, shape index: {}]   ;;  %s2879_s8 = inlined_call_operand.vmem [shape: bf16[32,32], index: 8, kind: input, shape index: {}]   ;;  %s2880_s9 = inlined_call_operand.vmem [shape: f32[2,32], index: 9, kind: input, shape index: {}]   ;;  %s2881_s10 = inlined_call_operand.vmem [shape: bf16[8,32], index: 10, kind: input, shape index: {}]   ;;  %s2882_s11 = inlined_call_operand.vmem [shape: bf16[32,32], index: 11, kind: input, shape index: {}]   ;;  %s2883_s12 = inlined_call_operand.vmem [shape: f32[2,32], index: 12, kind: input, shape index: {}]   ;;  %s2884_s13 = inlined_call_operand.vmem [shape: bf16[2,32], index: 13, kind: input, shape index: {}]   ;;  %s2885_s14 = inlined_call_operand.vmem [shape: bf16[32,32], index: 14, kind: input, shape index: {}]   ;;  %s2886_s15 = inlined_call_operand.vmem [shape: f32[2,32], index: 15, kind: input, shape index: {}]   ;;  %s2887_s16 = inlined_call_operand.vmem [shape: bf16[2,96,64], index: 16, kind: input, shape index: {}]   ;;  %s2888_s17 = inlined_call_operand.vmem [shape: bf16[2,64,32], index: 17, kind: input, shape index: {}]   ;;  %s2889_s18 = inlined_call_operand.vmem [shape: bf16[2,64,64], index: 18, kind: input, shape index: {}]   ;;  %s2890_s19 = inlined_call_operand.vmem [shape: bf16[2,64,32], index: 19, kind: input, shape index: {}]   ;;  %s2891_s20 = inlined_call_operand.vmem [shape: f32[2,8,64], index: 20, kind: input, shape index: {}]   ;;  %s2892_s21 = inlined_call_operand.vmem [shape: bf16[64,32], index: 21, kind: input, shape index: {}]   ;;  %s2893_s22 = inlined_call_operand.vmem [shape: bf16[32,256], index: 22, kind: input, shape index: {}]   ;;  %s2894_s23 = inlined_call_operand.vmem [shape: f32[1,32], index: 23, kind: input, shape index: {}]   ;;  %s2895_s24 = inlined_call_operand.vmem [shape: f32[1,256], index: 24, kind: input, shape index: {}]   ;;  %s2896_s25 = inlined_call_operand.hbm [shape: f32[2,256], index: 25, kind: output, shape index: {0}]   ;;  %s2897_s26 = inlined_call_operand.hbm [shape: f32[12,32], index: 26, kind: output, shape index: {1}]  }
   0x1   :  { %2906 = sst [smem:[#allocation14_spill]] %s2871_s0 }
   0x2   :  { %2907 = sst [smem:[#allocation15_spill]] %s2872_s1 }
   0x3   :  { %2908 = sst [smem:[#allocation16_spill]] %s2873_s2 }
   0x4   :  { %2909 = sst [smem:[#allocation17_spill]] %s2874_s3 }
   0x5   :  { %2910 = sst [smem:[#allocation18_spill]] %s2875_s4 }
   0x6   :  { %2911 = sst [smem:[#allocation19_spill]] %s2876_s5 }
   0x7   :  { %2912 = sst [smem:[#allocation20_spill]] %s2877_s6 }
   0x8   :  { %2913 = sst [smem:[#allocation21_spill]] %s2878_s7 }
   0x9   :  { %2914 = sst [smem:[#allocation22_spill]] %s2879_s8 }
   0xa   :  { %2915 = sst [smem:[#allocation23_spill]] %s2880_s9 }
   0xb   :  { %2916 = sst [smem:[#allocation24_spill]] %s2881_s10 }
   0xc   :  { %32 = vsyncpa [#allocation7], 0 }
   0xd   :  { %33 = vsyncpa [#allocation6], 0 }
   0xe   :  { %34 = vsyncpa [#allocation10], 0  ;;  %s2917_s7 = sld [smem:[#allocation14_spill]]  ;;  %s2200_s8 = smov [#allocation5]  }
  0x14   :  { %s40_s28 = sshll.u32 %s2917_s7, 4  ;;  %s41_s28 = int_to_ptr.vmem [resolvable:$true] %s40_s28 }
  0x15   :  { %43 = dma.vmem_to_smem %s41_s28, 16, %s2200_s8, [#allocation7]  }
  0x16   :  { %2194 = dma.done.wait [#allocation7], 16  }
  0x17   :  { %2195 = vsyncadd [#allocation7], 4294967280 }
  0x18   :  { %96 = sfence }
  0x19   :  { %s2918_s0 = sld [smem:[#allocation21_spill]]  ;;  %vm211_vm0 = vcmask 1043456   ;;  %vm207_vm1 = vcmask 588800   ;;  %vm295_vm2 = vcmask 64512   ;;  %v2201_v31 = vmov 1   ;;  %v2046_v51 = vld [vmem:[%s2882_s11 + $0x8] sm:$0xff] }
  0x1a   :  { %s2919_s3 = sld [smem:[#allocation24_spill]]  ;;  %2104 = vset.pattern.permute.xlu0 %v2201_v31  ;;  %2105 = vset.pattern.permute.xlu1 %v2201_v31  ;;  %vm268_vm5 = vcmask 261120   ;;  %v379_v52 = vld [vmem:[%s2884_s13] sm:$0x1]  ;;  %vm386_vm6 = vcmask 1040384   ;;  %v2202_v53 = vmov 0  }
  0x1b   :  { %s2920_s8 = sld [smem:[#allocation18_spill]]  ;;  %v388_v54 = vsel %vm386_vm6, %v379_v52, 0  ;;  %2107 = vset.pattern.permute.xlu2 %v2202_v53  ;;  %v2045_v56 = vld [vmem:[%s2882_s11] sm:$0xff]  ;;  %vm382_vm7 = vcmask 15360   ;;  %vm841_vm11 = vcmask 257024   ;;  %vm506_vm14 = vcmask 1045504  }
  0x1c   :  { %s2921_s28 = sld [smem:[#allocation19_spill]]  ;;  %v2451_v58 = vld [vmem:[%s2883_s12] sm:$0x3]  ;;  %vm2905_vm15 = vcmask 97280   ;;  %s2205_s2 = smov 32  }
  0x1d   :  { %s2922_s30 = sld [smem:[#allocation22_spill]]  ;;  %v294_v59 = vperm.slane %v2451_v58, 0  ;;  %v2047_v31 = vld [vmem:[%s2885_s14] sm:$0xff]  ;;  %s2207_s29 = smov [#allocation9]  }
  0x1e   :  { %s2923_s6 = sld [smem:[#allocation15_spill]]  ;;  %s1688_s12 = sshll.u32 %s2897_s26, 4  ;;  %s1689_s12 = int_to_ptr.hbm [resolvable:$true] %s1688_s12 }
  0x1f   :  { %v2038_v0 = vld [vmem:[%s2918_s0 + $0x38] sm:$0xff]  ;;  %v128_v1 = vld [vmem:[%s2918_s0 + $0x60] sm:$0xf]  ;;  %v2037_v3 = vld [vmem:[%s2918_s0 + $0x30] sm:$0xff]  ;;  %s2925_s27 = sld [smem:[#allocation20_spill]]  ;;  %s1678_s26 = sshll.u32 %s2896_s25, 4  ;;  %s1679_s26 = int_to_ptr.hbm [resolvable:$true] %s1678_s26 }
  0x20   :  { %v181_v2 = vunpack.c.l.b16 %v128_v1  ;;  %215 = vmatpush.bf16.msra.mxu0 %v2038_v0  ;;  %v2036_v6 = vld [vmem:[%s2918_s0 + $0x28] sm:$0xff]  ;;  %v291_v7 = vld [vmem:[%s2919_s3] sm:$0xf]  ;;  %v2042_v8 = vld [vmem:[%s2918_s0 + $0x58] sm:$0xff]  ;;  %s1764_s13 = sld [smem:[#allocation5 + $0x1]] }
  0x21   :  { %v303_v9 = vsel %vm211_vm0, %v291_v7, 0  ;;  %v2035_v10 = vld [vmem:[%s2918_s0 + $0x20] sm:$0xff]  ;;  %v2041_v11 = vld [vmem:[%s2918_s0 + $0x50] sm:$0xff]  ;;  %v2034_v12 = vld [vmem:[%s2918_s0 + $0x18] sm:$0xff]  ;;  %s1788_s3 = sld [smem:[#allocation5 + $0x3]] }
  0x22   :  { %v194_v4 = vpack.c.b16 %v181_v2, %v181_v2  ;;  %312 = vmatpush.bf16.msra.mxu3 %v303_v9  ;;  %v2040_v13 = vld [vmem:[%s2918_s0 + $0x48] sm:$0xff]  ;;  %v2033_v14 = vld [vmem:[%s2918_s0 + $0x10] sm:$0xff]  ;;  %v2039_v15 = vld [vmem:[%s2918_s0 + $0x40] sm:$0xff]  ;;  %v444_v9 = vlaneseq  ;;  %s2926_s4 = sld [smem:[#allocation16_spill]] }
  0x23   :  { %v101_v16 = vld [vmem:[%s2920_s8 + $0x8] sm:$0xff]  ;;  %v103_v17 = vld [vmem:[%s2920_s8 + $0x18] sm:$0xf]  ;;  %v2031_v20 = vld [vmem:[%s2918_s0] sm:$0xff]  ;;  %s2931_s11 = sld [smem:[#allocation17_spill]] }
  0x24   :  { %v213_v5 = vsel %vm211_vm0, %v194_v4, 0  ;;  %216 = vmatpush.bf16.msra.mxu0 %v2037_v3  ;;  %v130_v18 = vpack.c.bf16 %v103_v17, %v101_v16  ;;  %v2032_v19 = vld [vmem:[%s2918_s0 + $0x8] sm:$0xff]  ;;  %v100_v21 = vld [vmem:[%s2920_s8] sm:$0xff]  ;;  %v102_v22 = vld [vmem:[%s2920_s8 + $0x10] sm:$0xf]  ;;  %s2209_s0 = smov 8  }
  0x25   :  { %232 = vmatpush.bf16.msra.mxu1 %v213_v5  ;;  %v129_v23 = vpack.c.bf16 %v102_v22, %v100_v21  ;;  %v288_v24 = vld [vmem:[%s2921_s28] sm:$0xff]  ;;  %v289_v25 = vld [vmem:[%s2921_s28 + $0x8] sm:$0xff]  ;;  %v290_v30 = vld [vmem:[%s2921_s28 + $0x10] sm:$0xff]  ;;  %s98_s28 = sld [smem:[#allocation5]]  ;;  %v2203_v22 = vmov 0.0  }
  0x26   :  { %v292_v26 = vpack.c.bf16 %v289_v25, %v288_v24  ;;  %v2044_v27 = vld [vmem:[%s2922_s30 + $0x8] sm:$0xff]  ;;  %v2043_v28 = vld [vmem:[%s2922_s30] sm:$0xff]  ;;  %v293_v32 = vpack.c.bf16 %v290_v30, %v290_v30  ;;  %v443_v33 = vld [vmem:[%s2923_s6 + $0x10] sm:$0xff]  ;;  %s2924_s30 = sld [smem:[#allocation23_spill]]  ;;  %v326_v62 = vstv %s1764_s13 }
  0x27   :  { %278 = vmatpush.bf16.msra.mxu2 %v2044_v27  ;;  %v441_v29 = vld [vmem:[%s2923_s6] sm:$0xff]  ;;  %470 = vperm.xlu1 %2105, %v443_v33   ;;  %v442_v34 = vld [vmem:[%s2923_s6 + $0x8] sm:$0xff] }
  0x28   :  { %217 = vmatpush.bf16.msra.mxu0 %v2036_v6  ;;  %1765 = vmatmul.msk.bf16.vlgmr.msra.gmra.mxu3 %vm295_vm2, %v292_v26  ;;  %v378_v55 = vld [vmem:[%s2925_s27] sm:$0x3]  ;;  %v2048_v30 = vld [vmem:[%s2885_s14 + $0x8] sm:$0xff]  ;;  %s2204_s14 = smov 64  }
  0x29   :  { %233 = vmatpush.bf16.msra.mxu1 %v2042_v8  ;;  %464 = vperm.xlu0 %2104, %v441_v29   ;;  %v380_v57 = vpack.c.bf16 %v378_v55, %v378_v55 }
  0x2a   :  { %450 = vperm.xlu2 %2107, %v442_v34   ;;  %434 = vmatpush.bf16.msrb.mxu3 %v2048_v30 }
  0x2b   :  { %279 = vmatpush.bf16.msra.mxu2 %v2043_v28  ;;  %v245_v41 = vstv %s98_s28 }
  0x2c   :  { %218 = vmatpush.bf16.msra.mxu0 %v2035_v10  ;;  %v2432_v35 = vld [vmem:[%s2924_s30] sm:$0x3]  ;;  %s1777_s30 = sld [smem:[#allocation5 + $0x2]] }
  0x2d   :  { %234 = vmatpush.bf16.msra.mxu1 %v2041_v11  ;;  %v131_v36 = vperm.slane %v2432_v35, 0  ;;  %v255_v7 = vperm.slane %v2432_v35, 1 }
  0x2e   :  { %435 = vmatpush.bf16.msrb.mxu3 %v2047_v31 }
  0x2f   :  { %2106 = vset.pattern.permute.xlu1 %v2202_v53  ;;  %364 = vmatpush.bf16.msrb.mxu2 %v2046_v51 }
  0x30   :  { %219 = vmatpush.bf16.msra.mxu0 %v2034_v12  ;;  %447 = vperm.xlu1 %2106, %v441_v29  }
  0x31   :  { %235 = vmatpush.bf16.msra.mxu1 %v2040_v13  ;;  %467 = vperm.xlu0 %2104, %v442_v34  }
  0x32   :  { %453 = vperm.xlu2 %2107, %v443_v33  }
  0x33   :  { %365 = vmatpush.bf16.msrb.mxu2 %v2045_v56 }
  0x34   :  { %220 = vmatpush.bf16.msra.mxu0 %v2033_v14  ;;  %v445_v14 = vand.u32 127, %v444_v9 }
  0x35   :  { %236 = vmatpush.bf16.msra.mxu1 %v2039_v15 }
  0x38   :  { %1754 = vmatmul.msk.bf16.vlgmr.msra.gmra.mxu1 %vm207_vm1, %v130_v18  ;;  %221 = vmatpush.bf16.msra.mxu0 %v2032_v19 }
  0x39   :  { %1766 = vmatmul.msk.bf16.gmra.mxu3 %vm295_vm2, %v293_v32  ;;  %397 = vmatpush.bf16.msrb.mxu1 %v388_v54 }
  0x3c   :  { %222 = vmatpush.bf16.msra.mxu0 %v2031_v20 }
  0x3f   :  { %223 = vmatmul.bf16.vlgmr.msra.gmra.mxu0 %v129_v23 }
  0x48   :  { %1778 = vmatmul.msk.bf16.vlgmr.msrb.gmra.mxu1 %vm382_vm7, %v380_v57  ;;  %vm567_vm7 = vcmask 523520  }
  0x84   :  { %v451_v32 = vpop.permute.xlu2 %450 }
  0x85   :  { %vm456_vm2 = vcmp.eq.s32.totalorder %v445_v14, %v451_v32 }
  0x86   :  { %v459_v33 = vsel %vm456_vm2, 1.0, %v2203_v22 }
  0x99   :  { %v471_v27 = vpop.permute.xlu1 %470 }
  0x9a   :  { %vm474_vm1 = vcmp.eq.s32.totalorder %v445_v14, %v471_v27 }
  0x9b   :  { %v465_v6 = vpop.permute.xlu0 %464  ;;  %v477_v28 = vsel %vm474_vm1, 1.0, %v2203_v22 }
  0x9c   :  { %vm472_vm12 = vcmp.eq.s32.totalorder %v445_v14, %v465_v6  ;;  %v2476_v29 = vpack.c.bf16 %v477_v28, %v477_v28  ;;  %v2051_v6 = vld [vmem:[%s2887_s16 + $0x10] sm:$0xff] }
  0x9d   :  { %v475_v23 = vsel %vm472_vm12, 1.0, %v2203_v22 }
  0xa2   :  { %v448_v34 = vpop.permute.xlu1 %447 }
  0xa3   :  { %v468_v15 = vpop.permute.xlu0 %467 }
  0xa4   :  { %vm473_vm13 = vcmp.eq.s32.totalorder %v445_v14, %v468_v15 }
  0xa5   :  { %v476_v24 = vsel %vm473_vm13, 1.0, %v2203_v22 }
  0xa6   :  { %v2471_v26 = vpack.c.bf16 %v476_v24, %v475_v23  ;;  %v2551_v24 = vld [vmem:[%s2891_s20] sm:$0xff] }
  0xab   :  { %v314_v60 = vpop.f32.mrf.mxu3 }
  0xac   :  { %v315_v61 = vadd.f32 %v314_v60, %v294_v59 }
  0xae   :  { %v327_v63 = vmul.f32 %v326_v62, %v315_v61  ;;  %vm323_vm8 = vcmp.gt.f32.partialorder %v315_v61, 0.0 }
  0xb0   :  { %v330_v2 = vsel %vm323_vm8, %v315_v61, %v327_v63  ;;  %vm583_vm8 = vcmask 785920  }
  0xb3   :  { %v316_v0 = vpop.f32.mrf.mxu3 }
  0xb4   :  { %v317_v1 = vadd.f32 %v316_v0, %v294_v59 }
  0xb5   :  { %v238_v37 = vpop.f32.mrf.mxu1 }
  0xb6   :  { %vm324_vm9 = vcmp.gt.f32.partialorder %v317_v1, 0.0  ;;  %v328_v3 = vmul.f32 %v326_v62, %v317_v1 }
  0xb8   :  { %v331_v4 = vsel %vm324_vm9, %v317_v1, %v328_v3  ;;  %vm2903_vm9 = vcmask 785408  }
  0xb9   :  { %v337_v5 = vpack.c.bf16 %v331_v4, %v330_v2  ;;  %v2053_v4 = vld [vmem:[%s2887_s16 + $0x20] sm:$0xff] }
  0xbc   :  { %v224_v38 = vpop.f32.mrf.mxu0  ;;  %v319_v11 = vpop.f32.mrf.mxu3 }
  0xbd   :  { %v225_v39 = vadd.f32 %v224_v38, %v131_v36  ;;  %v240_v44 = vpop.f32.mrf.mxu1  ;;  %v320_v12 = vadd.f32 %v319_v11, %v294_v59  ;;  %v377_v38 = vld [vmem:[%s2886_s15] sm:$0x3]  ;;  %v2054_v59 = vld [vmem:[%s2887_s16 + $0x28] sm:$0xff] }
  0xbf   :  { %v239_v40 = vadd.f32 %v238_v37, %v225_v39  ;;  %vm325_vm10 = vcmp.gt.f32.partialorder %v320_v12, 0.0  ;;  %v329_v13 = vmul.f32 %v326_v62, %v320_v12  ;;  %v454_v37 = vpop.permute.xlu2 %453  ;;  %v381_v39 = vperm.slane %v377_v38, 0 }
  0xc1   :  { %v246_v45 = vmul.f32 %v245_v41, %v239_v40  ;;  %vm243_vm3 = vcmp.gt.f32.partialorder %v239_v40, 0.0  ;;  %v332_v16 = vsel %vm325_vm10, %v320_v12, %v329_v13  ;;  %vm666_vm10 = vcmask 523264  }
  0xc2   :  { %v338_v17 = vpack.c.bf16 %v332_v16, %v332_v16 }
  0xc3   :  { %v248_v48 = vsel %vm243_vm3, %v239_v40, %v246_v45  ;;  %vm455_vm3 = vcmp.eq.s32.totalorder %v445_v14, %v448_v34 }
  0xc4   :  { %v226_v42 = vpop.f32.mrf.mxu0  ;;  %v321_v20 = vpop.f32.mrf.mxu3  ;;  %v458_v35 = vsel %vm455_vm3, 1.0, %v2203_v22 }
  0xc5   :  { %v227_v43 = vadd.f32 %v226_v42, %v131_v36  ;;  %v2488_v36 = vpack.c.bf16 %v459_v33, %v458_v35  ;;  %v404_v42 = vstv %s1777_s30 }
  0xc7   :  { %v241_v46 = vadd.f32 %v240_v44, %v227_v43 }
  0xc9   :  { %vm244_vm4 = vcmp.gt.f32.partialorder %v241_v46, 0.0  ;;  %v247_v47 = vmul.f32 %v245_v41, %v241_v46  ;;  %v399_v41 = vpop.f32.mrf.mxu1 }
  0xca   :  { %v400_v43 = vadd.f32 %v399_v41, %v381_v39  ;;  %v2206_v39 = vmov 64.0  }
  0xcb   :  { %v249_v49 = vsel %vm244_vm4, %v241_v46, %v247_v47  ;;  %vm457_vm4 = vcmp.eq.s32.totalorder %v445_v14, %v454_v37  ;;  %2111 = vrcp.f32 %v2206_v39 }
  0xcc   :  { %v254_v50 = vpack.c.bf16 %v249_v49, %v248_v48  ;;  %v460_v40 = vsel %vm457_vm4, 1.0, %v2203_v22  ;;  %vm403_vm6 = vcmp.gt.f32.partialorder %v400_v43, 0.0  ;;  %v405_v45 = vmul.f32 %v404_v42, %v400_v43 }
  0xcd   :  { %v2496_v44 = vpack.c.bf16 %v460_v40, %v460_v40  ;;  %v339_v49 = vperm.slane %v2451_v58, 1 }
  0xce   :  { %1763 = vmatmul.msk.bf16.vlgmr.msra.gmra.mxu2 %vm268_vm5, %v254_v50  ;;  %v406_v46 = vsel %vm403_vm6, %v400_v43, %v405_v45 }
  0xcf   :  { %v411_v47 = vpack.c.bf16 %v406_v46, %v406_v46  ;;  %650 = vmatpush.bf16.msra.mxu2 %v2054_v59 }
  0xd1   :  { %1787 = vmatmul.msk.bf16.vlgmr.msrb.gmra.mxu3 %vm268_vm5, %v411_v47  ;;  %v401_v48 = vpop.f32.mrf.mxu1  ;;  %v2112_v40 = vpop.eup %2111 }
  0xd2   :  { %v677_v41 = vmul.f32 64.0, %v2112_v40  ;;  %vm681_vm12 = vweird.f32 %v2112_v40 }
  0xd3   :  { %651 = vmatpush.bf16.msra.mxu2 %v2053_v4 }
  0xd4   :  { %v678_v42 = vsub.f32 1.0, %v677_v41 }
  0xd6   :  { %v679_v43 = vmul.f32 %v2112_v40, %v678_v42 }
  0xd8   :  { %v680_v45 = vadd.f32 %v2112_v40, %v679_v43 }
  0xda   :  { %v2557_v46 = vsel %vm681_vm12, %v2112_v40, %v680_v45 }
  0xde   :  { %1775 = vmatmul.msk.bf16.vlgmr.msrb.gmra.mxu2 %vm268_vm5, %v337_v5  ;;  %v2052_v5 = vld [vmem:[%s2887_s16 + $0x18] sm:$0xff] }
  0xdf   :  { %652 = vmatpush.bf16.msra.mxu2 %v2052_v5 }
  0xe3   :  { %653 = vmatpush.bf16.msra.mxu2 %v2051_v6  ;;  %v2056_v6 = vld [vmem:[%s2888_s17 + $0x8] sm:$0xff] }
  0xee   :  { %1776 = vmatmul.msk.bf16.gmra.mxu2 %vm268_vm5, %v338_v17 }
 0x151   :  { %v281_v8 = vpop.f32.mrf.mxu2 }
 0x152   :  { %v2456_v10 = vadd.f32 %v281_v8, %v255_v7  ;;  %v2049_v8 = vld [vmem:[%s2887_s16] sm:$0xff] }
 0x154   :  { %840 = vst.msk [vmem:[#allocation3] sm:$0xff] %vm268_vm5, %v2456_v10  ;;  %v2523_v1 = vpop.f32.mrf.mxu3 }
 0x159   :  { %v283_v18 = vpop.f32.mrf.mxu2 }
 0x15a   :  { %v2461_v19 = vadd.f32 %v283_v18, %v255_v7  ;;  %v2050_v7 = vld [vmem:[%s2887_s16 + $0x8] sm:$0xff] }
 0x15b   :  { %654 = vmatpush.bf16.msra.mxu2 %v2050_v7 }
 0x15c   :  { %v498_v21 = vpack.c.bf16 %v2461_v19, %v2456_v10  ;;  %842 = vst.msk [vmem:[#allocation3 + $0x8] sm:$0xf] %vm841_vm11, %v2461_v19  ;;  %v439_v3 = vpop.f32.mrf.mxu3 }
 0x15d   :  { %v2057_v3 = vld [vmem:[%s2888_s17 + $0x10] sm:$0xff] }
 0x15e   :  { %v508_v25 = vsel %vm506_vm14, %v498_v21, 0 }
 0x15f   :  { %517 = vmatpush.bf16.msrb.mxu0 %v508_v25  ;;  %541 = vmatpush.bf16.msra.mxu1 %v508_v25  ;;  %v604_v25 = vperm.slane %v2551_v24, 0 }
 0x160   :  { %655 = vmatpush.bf16.msra.mxu2 %v2049_v8  ;;  %v2055_v8 = vld [vmem:[%s2888_s17] sm:$0xff] }
 0x161   :  { %v367_v50 = vpop.f32.mrf.mxu2 }
 0x162   :  { %1792 = vmatmul.msk.bf16.vlgmr.msra.gmra.mxu1 %vm2905_vm15, %v2471_v26  ;;  %1790 = vmatmul.msk.bf16.vlgmr.msrb.gmra.mxu0 %vm2905_vm15, %v2488_v36  ;;  %v2502_v51 = vadd.f32 %v367_v50, %v339_v49 }
 0x164   :  { %574 = vrot.lane.b32.xlu2 %v2502_v51, %s2204_s14 }
 0x169   :  { %v369_v52 = vpop.f32.mrf.mxu2 }
 0x16a   :  { %v2511_v57 = vadd.f32 %v369_v52, %v339_v49 }
 0x171   :  { %v372_v53 = vpop.f32.mrf.mxu2 }
 0x172   :  { %1793 = vmatmul.msk.bf16.gmra.mxu1 %vm2905_vm15, %v2476_v29  ;;  %1791 = vmatmul.msk.bf16.gmra.mxu0 %vm2905_vm15, %v2496_v44  ;;  %v2506_v54 = vadd.f32 %v372_v53, %v339_v49 }
 0x174   :  { %578 = vrot.lane.b32.xlu2 %v2506_v54, %s2204_s14 }
 0x179   :  { %v374_v56 = vpop.f32.mrf.mxu2 }
 0x1be   :  { %v575_v12 = vpop.permute.xlu2 %574 }
 0x1ce   :  { %v579_v15 = vpop.permute.xlu2 %578 }
 0x1df   :  { %v543_v55 = vpop.f32.mrf.mxu1  ;;  %v519_v62 = vpop.f32.mrf.mxu0 }
 0x1e0   :  { %558 = vrot.lane.b32.xlu0 %v543_v55, %s2205_s2  ;;  %552 = vst.msk [vmem:[#allocation2] sm:$0xff] %vm268_vm5, %v519_v62 }
 0x1e7   :  { %v545_v58 = vpop.f32.mrf.mxu1  ;;  %v521_v63 = vpop.f32.mrf.mxu0 }
 0x1e8   :  { %576 = vrot.lane.b32.xlu0 %v2511_v57, %s2204_s14  ;;  %560 = vrot.lane.b32.xlu1 %v545_v58, %s2205_s2  ;;  %553 = vst.msk [vmem:[#allocation2 + $0x8] sm:$0xff] %vm268_vm5, %v521_v63 }
 0x1ef   :  { %v548_v60 = vpop.f32.mrf.mxu1  ;;  %v524_v0 = vpop.f32.mrf.mxu0 }
 0x1f0   :  { %562 = vrot.lane.b32.xlu1 %v548_v60, %s2205_s2  ;;  %554 = vst.msk [vmem:[#allocation2 + $0x10] sm:$0xff] %vm268_vm5, %v524_v0 }
 0x1f7   :  { %v550_v61 = vpop.f32.mrf.mxu1  ;;  %v526_v2 = vpop.f32.mrf.mxu0 }
 0x1f8   :  { %v2058_v2 = vld [vmem:[%s2888_s17 + $0x18] sm:$0xff] }
 0x1f9   :  { %803 = vmatpush.bf16.msra.mxu3 %v2058_v2 }
 0x1fd   :  { %804 = vmatpush.bf16.msra.mxu3 %v2057_v3 }
 0x201   :  { %805 = vmatpush.bf16.msra.mxu3 %v2056_v6 }
 0x205   :  { %806 = vmatpush.bf16.msra.mxu3 %v2055_v8 }
 0x252   :  { %v559_v11 = vpop.permute.xlu0 %558 }
 0x253   :  { %568 = vst.msk [vmem:[#allocation2] sm:$0xff] %vm567_vm7, %v559_v11 }
 0x254   :  { %584 = vst.msk [vmem:[#allocation2] sm:$0xff] %vm583_vm8, %v575_v12 }
 0x25a   :  { %v577_v13 = vpop.permute.xlu0 %576  ;;  %v561_v14 = vpop.permute.xlu1 %560 }
 0x25b   :  { %569 = vst.msk [vmem:[#allocation2 + $0x8] sm:$0xff] %vm567_vm7, %v561_v14  ;;  %v587_v17 = vld [vmem:[#allocation2] sm:$0xff] }
 0x25c   :  { %585 = vst.msk [vmem:[#allocation2 + $0x8] sm:$0xff] %vm583_vm8, %v577_v13 }
 0x262   :  { %v563_v16 = vpop.permute.xlu1 %562 }
 0x263   :  { %v588_v18 = vld [vmem:[#allocation2 + $0x8] sm:$0xff]  ;;  %570 = vst.msk [vmem:[#allocation2 + $0x10] sm:$0xff] %vm567_vm7, %v563_v16 }
 0x264   :  { %v602_v20 = vpack.c.bf16 %v588_v18, %v587_v17  ;;  %586 = vst.msk [vmem:[#allocation2 + $0x10] sm:$0xff] %vm583_vm8, %v579_v15 }
 0x266   :  { %1818 = vmatmul.msk.bf16.vlgmr.msra.gmra.mxu2 %vm2903_vm9, %v602_v20 }
 0x26b   :  { %v589_v21 = vld [vmem:[#allocation2 + $0x10] sm:$0xff] }
 0x26c   :  { %v603_v23 = vpack.c.bf16 %v589_v21, %v589_v21 }
 0x276   :  { %1819 = vmatmul.msk.bf16.gmra.mxu2 %vm2903_vm9, %v603_v23 }
 0x2e9   :  { %v657_v27 = vpop.f32.mrf.mxu2 }
 0x2ea   :  { %v658_v28 = vadd.f32 %v657_v27, %v604_v25 }
 0x2ec   :  { %v667_v30 = vsel %vm666_vm10, %v658_v28, 0.0 }
 0x2ed   :  { %668 = vadd.xlane.f32.xlu0 %v667_v30 }
 0x2f1   :  { %v659_v31 = vpop.f32.mrf.mxu2 }
 0x2f2   :  { %v660_v32 = vadd.f32 %v659_v31, %v604_v25 }
 0x2f4   :  { %v670_v33 = vsel %vm666_vm10, %v660_v32, 0.0 }
 0x2f5   :  { %671 = vadd.xlane.f32.xlu1 %v670_v33 }
 0x2f9   :  { %v662_v34 = vpop.f32.mrf.mxu2 }
 0x2fa   :  { %v663_v35 = vadd.f32 %v662_v34, %v604_v25 }
 0x2fc   :  { %v673_v37 = vsel %vm666_vm10, %v663_v35, 0.0 }
 0x2fd   :  { %674 = vadd.xlane.f32.xlu2 %v673_v37 }
 0x301   :  { %v664_v38 = vpop.f32.mrf.mxu2 }
 0x302   :  { %v744_v38 = vperm.slane %v2551_v24, 2 }
 0x360   :  { %v669_v47 = vpop.xlane.xlu0 %668 }
 0x361   :  { %v683_v48 = vmul.f32 %v2557_v46, %v669_v47 }
 0x363   :  { %v686_v49 = vsub.f32 %v658_v28, %v683_v48 }
 0x365   :  { %v689_v50 = vmul.f32 %v686_v49, %v686_v49 }
 0x367   :  { %v692_v52 = vsel %vm666_vm10, %v689_v50, 0.0  ;;  %v751_v50 = vstv %s1788_s3 }
 0x368   :  { %v672_v53 = vpop.xlane.xlu1 %671  ;;  %693 = vadd.xlane.f32.xlu2 %v692_v52 }
 0x369   :  { %v684_v55 = vmul.f32 %v2557_v46, %v672_v53 }
 0x36b   :  { %v687_v56 = vsub.f32 %v660_v32, %v684_v55  ;;  %v740_v32 = vperm.slane %v2551_v24, 1 }
 0x36d   :  { %v690_v58 = vmul.f32 %v687_v56, %v687_v56 }
 0x36f   :  { %v695_v59 = vsel %vm666_vm10, %v690_v58, 0.0 }
 0x370   :  { %696 = vadd.xlane.f32.xlu0 %v695_v59  ;;  %v675_v60 = vpop.xlane.xlu2 %674 }
 0x371   :  { %v685_v61 = vmul.f32 %v2557_v46, %v675_v60 }
 0x373   :  { %v2564_v62 = vsub.f32 %v663_v35, %v685_v61 }
 0x375   :  { %v691_v63 = vmul.f32 %v2564_v62, %v2564_v62 }
 0x377   :  { %v698_v0 = vsel %vm666_vm10, %v691_v63, 0.0 }
 0x378   :  { %699 = vadd.xlane.f32.xlu1 %v698_v0 }
 0x3db   :  { %v694_v4 = vpop.xlane.xlu2 %693 }
 0x3dc   :  { %v701_v5 = vmul.f32 %v694_v4, %v2557_v46 }
 0x3de   :  { %v704_v7 = vadd.f32 1e-05, %v701_v5 }
 0x3e0   :  { %2113 = vrsqrt.f32 %v704_v7  ;;  %vm713_vm1 = vweird.f32 %v704_v7 }
 0x3e3   :  { %v697_v11 = vpop.xlane.xlu0 %696 }
 0x3e4   :  { %v702_v12 = vmul.f32 %v697_v11, %v2557_v46  ;;  %v2590_v11 = vshrl.u32 %v444_v9, 7 }
 0x3e6   :  { %v2114_v13 = vpop.eup %2113  ;;  %v705_v14 = vadd.f32 1e-05, %v702_v12  ;;  %v483_v12 = vadd.s32 8, %v2590_v11 }
 0x3e7   :  { %v708_v15 = vmul.f32 %v2114_v13, %v704_v7  ;;  %vm714_vm13 = vweird.f32 %v2114_v13 }
 0x3e8   :  { %2115 = vrsqrt.f32 %v705_v14  ;;  %vm715_vm2 = vmor %vm713_vm1, %vm714_vm13  ;;  %vm723_vm4 = vweird.f32 %v705_v14 }
 0x3e9   :  { %v709_v16 = vmul.f32 %v2114_v13, %v708_v15 }
 0x3eb   :  { %v710_v17 = vmul.f32 0.5, %v709_v16  ;;  %v700_v18 = vpop.xlane.xlu1 %699 }
 0x3ec   :  { %v703_v20 = vmul.f32 %v700_v18, %v2557_v46 }
 0x3ed   :  { %v711_v21 = vsub.f32 1.5, %v710_v17 }
 0x3ee   :  { %v2116_v23 = vpop.eup %2115  ;;  %v706_v25 = vadd.f32 1e-05, %v703_v20 }
 0x3ef   :  { %v712_v27 = vmul.f32 %v2114_v13, %v711_v21  ;;  %v718_v28 = vmul.f32 %v2116_v23, %v705_v14  ;;  %vm724_vm3 = vweird.f32 %v2116_v23 }
 0x3f0   :  { %2117 = vrsqrt.f32 %v706_v25  ;;  %vm725_vm6 = vmor %vm723_vm4, %vm724_vm3  ;;  %vm733_vm13 = vweird.f32 %v706_v25 }
 0x3f1   :  { %v716_v30 = vsel %vm715_vm2, %v2114_v13, %v712_v27  ;;  %v719_v31 = vmul.f32 %v2116_v23, %v718_v28  ;;  %v2108_v13 = vld [vmem:[%s2926_s4] ss:$0 sm:$0xff]  ;;  %s1789_s4 = sld [smem:[#allocation5 + $0x4]] }
 0x3f2   :  { %v737_v33 = vmul.f32 %v716_v30, %v686_v49  ;;  %vm486_vm4 = vcmp.eq.s32.totalorder %v483_v12, %v2108_v13 }
 0x3f3   :  { %v720_v34 = vmul.f32 0.5, %v719_v31  ;;  %v488_v21 = vsel %vm486_vm4, 1.0, %v2203_v22  ;;  %v2062_v31 = vld [vmem:[%s2889_s18 + $0x18] sm:$0xff] }
 0x3f4   :  { %v741_v39 = vmul.f32 %v740_v32, %v737_v33  ;;  %897 = vmatpush.bf16.msrb.mxu1 %v2062_v31  ;;  %v952_v31 = vperm.slane %v2551_v24, 5 }
 0x3f5   :  { %v721_v35 = vsub.f32 1.5, %v720_v34  ;;  %v2060_v34 = vld [vmem:[%s2889_s18 + $0x8] sm:$0xff] }
 0x3f6   :  { %v2118_v37 = vpop.eup %2117  ;;  %v745_v45 = vadd.f32 %v744_v38, %v741_v39 }
 0x3f7   :  { %v722_v40 = vmul.f32 %v2116_v23, %v721_v35  ;;  %v728_v41 = vmul.f32 %v2118_v37, %v706_v25  ;;  %vm734_vm12 = vweird.f32 %v2118_v37  ;;  %v2059_v35 = vld [vmem:[%s2889_s18] sm:$0xff] }
 0x3f8   :  { %v752_v55 = vmul.f32 %v751_v50, %v745_v45  ;;  %vm748_vm1 = vcmp.gt.f32.partialorder %v745_v45, 0.0  ;;  %vm735_vm2 = vmor %vm733_vm13, %vm734_vm12  ;;  %vm852_vm12 = vcmask 519424   ;;  %vm2904_vm13 = vcmask 519168  }
 0x3f9   :  { %v726_v42 = vsel %vm725_vm6, %v2116_v23, %v722_v40  ;;  %v729_v43 = vmul.f32 %v2118_v37, %v728_v41  ;;  %vm819_vm6 = vcmask 195584   ;;  %v865_v41 = vperm.slane %v2551_v24, 4 }
 0x3fa   :  { %v738_v47 = vmul.f32 %v726_v42, %v687_v56  ;;  %v755_v63 = vsel %vm748_vm1, %v745_v45, %v752_v55 }
 0x3fb   :  { %v730_v48 = vmul.f32 0.5, %v729_v43 }
 0x3fc   :  { %v742_v52 = vmul.f32 %v740_v32, %v738_v47 }
 0x3fd   :  { %v731_v49 = vsub.f32 1.5, %v730_v48 }
 0x3fe   :  { %v746_v53 = vadd.f32 %v744_v38, %v742_v52 }
 0x3ff   :  { %v732_v58 = vmul.f32 %v2118_v37, %v731_v49 }
 0x400   :  { %vm749_vm9 = vcmp.gt.f32.partialorder %v746_v53, 0.0  ;;  %v753_v59 = vmul.f32 %v751_v50, %v746_v53 }
 0x401   :  { %v736_v60 = vsel %vm735_vm2, %v2118_v37, %v732_v58 }
 0x402   :  { %v739_v61 = vmul.f32 %v736_v60, %v2564_v62  ;;  %v756_v0 = vsel %vm749_vm9, %v746_v53, %v753_v59  ;;  %v768_v62 = vperm.slane %v2551_v24, 3  ;;  %vm485_vm9 = vcmp.eq.s32.totalorder %v2590_v11, %v2108_v13 }
 0x403   :  { %v766_v2 = vpack.c.bf16 %v756_v0, %v755_v63  ;;  %v487_v20 = vsel %vm485_vm9, 1.0, %v2203_v22 }
 0x404   :  { %v743_v56 = vmul.f32 %v740_v32, %v739_v61  ;;  %v2611_v27 = vpack.c.bf16 %v488_v21, %v487_v20  ;;  %v2061_v32 = vld [vmem:[%s2889_s18 + $0x10] sm:$0xff] }
 0x405   :  { %1836 = vmatmul.msk.bf16.vlgmr.msra.gmra.mxu3 %vm666_vm10, %v766_v2  ;;  %898 = vmatpush.bf16.msrb.mxu1 %v2061_v32  ;;  %v2066_v2 = vld [vmem:[%s2890_s19 + $0x18] sm:$0xff] }
 0x406   :  { %v747_v3 = vadd.f32 %v744_v38, %v743_v56  ;;  %1006 = vmatpush.bf16.msrb.mxu3 %v2066_v2  ;;  %v2065_v56 = vld [vmem:[%s2890_s19 + $0x10] sm:$0xff] }
 0x408   :  { %v754_v4 = vmul.f32 %v751_v50, %v747_v3  ;;  %vm750_vm3 = vcmp.gt.f32.partialorder %v747_v3, 0.0 }
 0x409   :  { %899 = vmatpush.bf16.msrb.mxu1 %v2060_v34 }
 0x40a   :  { %v757_v5 = vsel %vm750_vm3, %v747_v3, %v754_v4  ;;  %1007 = vmatpush.bf16.msrb.mxu3 %v2065_v56 }
 0x40b   :  { %v767_v6 = vpack.c.bf16 %v757_v5, %v757_v5  ;;  %v2064_v5 = vld [vmem:[%s2890_s19 + $0x8] sm:$0xff] }
 0x40d   :  { %900 = vmatpush.bf16.msrb.mxu1 %v2059_v35  ;;  %v955_v35 = vperm.slane %v2551_v24, 6 }
 0x40e   :  { %1008 = vmatpush.bf16.msrb.mxu3 %v2064_v5  ;;  %v2068_v5 = vld [vmem:[%s2887_s16 + $0x38] sm:$0xff] }
 0x415   :  { %1837 = vmatmul.msk.bf16.gmra.mxu3 %vm666_vm10, %v767_v6 }
 0x488   :  { %v808_v7 = vpop.f32.mrf.mxu3 }
 0x489   :  { %v2605_v18 = vadd.f32 %v808_v7, %v768_v62  ;;  %v2063_v7 = vld [vmem:[%s2890_s19] sm:$0xff] }
 0x48a   :  { %1009 = vmatpush.bf16.msrb.mxu3 %v2063_v7 }
 0x48b   :  { %v1018_v2 = vadd.f32 %v2605_v18, %v2502_v51 }
 0x490   :  { %v810_v8 = vpop.f32.mrf.mxu3 }
 0x491   :  { %v2602_v17 = vadd.f32 %v810_v8, %v768_v62 }
 0x493   :  { %v817_v23 = vpack.c.bf16 %v2602_v17, %v2605_v18 }
 0x498   :  { %v813_v14 = vpop.f32.mrf.mxu3 }
 0x499   :  { %v2597_v15 = vadd.f32 %v813_v14, %v768_v62 }
 0x49b   :  { %v818_v16 = vpack.c.bf16 %v2597_v15, %v2597_v15 }
 0x49d   :  { %v824_v9 = vsel %vm211_vm0, %v818_v16, 0 }
 0x49e   :  { %832 = vmatpush.bf16.msra.mxu0 %v824_v9 }
 0x4a0   :  { %v815_v25 = vpop.f32.mrf.mxu3 }
 0x4a2   :  { %833 = vmatpush.bf16.msra.mxu0 %v817_v23 }
 0x4a5   :  { %1838 = vmatmul.msk.bf16.vlgmr.msra.gmra.mxu0 %vm819_vm6, %v2611_v27 }
 0x522   :  { %v835_v28 = vpop.f32.mrf.mxu0 }
 0x523   :  { %845 = vrot.lane.b32.xlu2 %v835_v28, %s2205_s2 }
 0x52a   :  { %v837_v30 = vpop.f32.mrf.mxu0 }
 0x52b   :  { %847 = vrot.lane.b32.xlu0 %v837_v30, %s2205_s2 }
 0x57d   :  { %v846_v33 = vpop.permute.xlu2 %845 }
 0x57e   :  { %851 = vst.msk [vmem:[#allocation3] sm:$0xff] %vm567_vm7, %v846_v33 }
 0x585   :  { %v854_v38 = vld [vmem:[#allocation3] sm:$0xff] }
 0x59d   :  { %v848_v37 = vpop.permute.xlu0 %847 }
 0x59e   :  { %853 = vst.msk [vmem:[#allocation3 + $0x8] sm:$0xf] %vm852_vm12, %v848_v37 }
 0x5a5   :  { %v855_v39 = vld [vmem:[#allocation3 + $0x8] sm:$0xf] }
 0x5a6   :  { %v864_v40 = vpack.c.bf16 %v855_v39, %v854_v38 }
 0x5a8   :  { %1855 = vmatmul.msk.bf16.vlgmr.msrb.gmra.mxu1 %vm666_vm10, %v864_v40 }
 0x625   :  { %v902_v42 = vpop.f32.mrf.mxu1 }
 0x626   :  { %v903_v43 = vadd.f32 %v902_v42, %v865_v41  ;;  %v960_v42 = vstv %s1789_s4 }
 0x628   :  { %v907_v45 = vsel %vm666_vm10, %v903_v43, 0.0 }
 0x629   :  { %908 = vadd.xlane.f32.xlu1 %v907_v45 }
 0x62d   :  { %v904_v47 = vpop.f32.mrf.mxu1 }
 0x62e   :  { %v905_v48 = vadd.f32 %v904_v47, %v865_v41 }
 0x630   :  { %v911_v50 = vsel %vm2904_vm13, %v905_v48, 0.0 }
 0x631   :  { %912 = vadd.xlane.f32.xlu1 %v911_v50 }
 0x69c   :  { %v909_v52 = vpop.xlane.xlu1 %908 }
 0x69d   :  { %v914_v49 = vmul.f32 %v909_v52, %v2557_v46 }
 0x69f   :  { %v916_v53 = vsub.f32 %v903_v43, %v914_v49 }
 0x6a1   :  { %v918_v55 = vmul.f32 %v916_v53, %v916_v53 }
 0x6a3   :  { %v920_v58 = vsel %vm666_vm10, %v918_v55, 0.0 }
 0x6a4   :  { %921 = vadd.xlane.f32.xlu1 %v920_v58  ;;  %v913_v59 = vpop.xlane.xlu1 %912 }
 0x6a5   :  { %v915_v60 = vmul.f32 %v913_v59, %v2557_v46 }
 0x6a7   :  { %v917_v61 = vsub.f32 %v905_v48, %v915_v60 }
 0x6a9   :  { %v919_v63 = vmul.f32 %v917_v61, %v917_v61 }
 0x6ab   :  { %v923_v0 = vsel %vm2904_vm13, %v919_v63, 0.0 }
 0x6ac   :  { %924 = vadd.xlane.f32.xlu0 %v923_v0 }
 0x717   :  { %v922_v3 = vpop.xlane.xlu1 %921 }
 0x718   :  { %v926_v4 = vmul.f32 %v922_v3, %v2557_v46 }
 0x71a   :  { %v928_v6 = vadd.f32 1e-05, %v926_v4 }
 0x71c   :  { %2119 = vrsqrt.f32 %v928_v6  ;;  %vm936_vm2 = vweird.f32 %v928_v6 }
 0x71f   :  { %v925_v8 = vpop.xlane.xlu0 %924 }
 0x720   :  { %v927_v62 = vmul.f32 %v925_v8, %v2557_v46 }
 0x722   :  { %v2120_v12 = vpop.eup %2119  ;;  %v929_v13 = vadd.f32 1e-05, %v927_v62 }
 0x723   :  { %v931_v14 = vmul.f32 %v2120_v12, %v928_v6  ;;  %vm937_vm1 = vweird.f32 %v2120_v12  ;;  %v2067_v6 = vld [vmem:[%s2887_s16 + $0x30] sm:$0xff] }
 0x724   :  { %2121 = vrsqrt.f32 %v929_v13  ;;  %vm938_vm3 = vmor %vm936_vm2, %vm937_vm1  ;;  %vm946_vm4 = vweird.f32 %v929_v13 }
 0x725   :  { %v932_v16 = vmul.f32 %v2120_v12, %v931_v14 }
 0x727   :  { %v933_v9 = vmul.f32 0.5, %v932_v16 }
 0x729   :  { %v934_v20 = vsub.f32 1.5, %v933_v9 }
 0x72a   :  { %v2122_v21 = vpop.eup %2121 }
 0x72b   :  { %v935_v23 = vmul.f32 %v2120_v12, %v934_v20  ;;  %v941_v25 = vmul.f32 %v2122_v21, %v929_v13  ;;  %vm947_vm9 = vweird.f32 %v2122_v21 }
 0x72c   :  { %vm948_vm13 = vmor %vm946_vm4, %vm947_vm9 }
 0x72d   :  { %v939_v28 = vsel %vm938_vm3, %v2120_v12, %v935_v23  ;;  %v942_v30 = vmul.f32 %v2122_v21, %v941_v25  ;;  %v2722_v23 = vld [vmem:[%s2891_s20 + $0x8] sm:$0xff] }
 0x72e   :  { %v950_v32 = vmul.f32 %v939_v28, %v916_v53  ;;  %v974_v53 = vperm.slane %v2551_v24, 7  ;;  %v1116_v25 = vperm.slane %v2722_v23, 0 }
 0x72f   :  { %v943_v33 = vmul.f32 0.5, %v942_v30 }
 0x730   :  { %v953_v37 = vmul.f32 %v952_v31, %v950_v32 }
 0x731   :  { %v944_v34 = vsub.f32 1.5, %v943_v33 }
 0x732   :  { %v956_v40 = vadd.f32 %v955_v35, %v953_v37 }
 0x733   :  { %v945_v38 = vmul.f32 %v2122_v21, %v944_v34 }
 0x734   :  { %v961_v47 = vmul.f32 %v960_v42, %v956_v40  ;;  %vm958_vm1 = vcmp.gt.f32.partialorder %v956_v40, 0.0 }
 0x735   :  { %v949_v39 = vsel %vm948_vm13, %v2122_v21, %v945_v38  ;;  %vm2927_vm13 = vcmask 785408  }
 0x736   :  { %v951_v41 = vmul.f32 %v949_v39, %v917_v61  ;;  %v963_v50 = vsel %vm958_vm1, %v956_v40, %v961_v47  ;;  %vm2928_vm3 = vmmov %vm2927_vm13 }
 0x738   :  { %v954_v43 = vmul.f32 %v952_v31, %v951_v41 }
 0x73a   :  { %v957_v45 = vadd.f32 %v955_v35, %v954_v43 }
 0x73c   :  { %vm959_vm2 = vcmp.gt.f32.partialorder %v957_v45, 0.0  ;;  %v962_v48 = vmul.f32 %v960_v42, %v957_v45 }
 0x73e   :  { %v964_v52 = vsel %vm959_vm2, %v957_v45, %v962_v48 }
 0x73f   :  { %v973_v49 = vpack.c.bf16 %v964_v52, %v963_v50 }
 0x741   :  { %1872 = vmatmul.msk.bf16.vlgmr.msrb.gmra.mxu3 %vm666_vm10, %v973_v49 }
 0x7c4   :  { %v1011_v55 = vpop.f32.mrf.mxu3 }
 0x7c5   :  { %v1012_v58 = vadd.f32 %v1011_v55, %v974_v53 }
 0x7c7   :  { %v2658_v59 = vadd.f32 %v1012_v58, %v2456_v10 }
 0x7c9   :  { %1340 = vst.msk [vmem:[#allocation3] sm:$0xff] %vm268_vm5, %v2658_v59 }
 0x7cc   :  { %v1013_v60 = vpop.f32.mrf.mxu3 }
 0x7cd   :  { %v1014_v61 = vadd.f32 %v1013_v60, %v974_v53 }
 0x7cf   :  { %v2663_v63 = vadd.f32 %v1014_v61, %v2461_v19 }
 0x7d1   :  { %1341 = vst.msk [vmem:[#allocation3 + $0x8] sm:$0xf] %vm841_vm11, %v2663_v63  ;;  %v1025_v0 = vpack.c.bf16 %v2663_v63, %v2658_v59 }
 0x7d3   :  { %v1027_v24 = vsel %vm506_vm14, %v1025_v0, 0  ;;  %v2076_v0 = vld [vmem:[%s2888_s17 + $0x38] sm:$0xff] }
 0x7d4   :  { %1036 = vmatpush.bf16.msrb.mxu2 %v1027_v24  ;;  %1054 = vmatpush.bf16.msrb.mxu0 %v1027_v24  ;;  %v2075_v24 = vld [vmem:[%s2888_s17 + $0x30] sm:$0xff] }
 0x7d5   :  { %1307 = vmatpush.bf16.msra.mxu3 %v2076_v0 }
 0x7d7   :  { %1876 = vmatmul.msk.bf16.vlgmr.msrb.gmra.mxu2 %vm2905_vm15, %v2488_v36  ;;  %1878 = vmatmul.msk.bf16.vlgmr.msrb.gmra.mxu0 %vm2905_vm15, %v2471_v26  ;;  %v1019_v36 = vadd.f32 %v2602_v17, %v2511_v57  ;;  %v2072_v57 = vld [vmem:[%s2887_s16 + $0x58] sm:$0xff]  ;;  %v2069_v17 = vld [vmem:[%s2887_s16 + $0x40] sm:$0xff] }
 0x7d8   :  { %1161 = vmatpush.bf16.msra.mxu1 %v2072_v57 }
 0x7d9   :  { %1308 = vmatpush.bf16.msra.mxu3 %v2075_v24  ;;  %v1272_v24 = vperm.slane %v2722_v23, 3 }
 0x7e7   :  { %1877 = vmatmul.msk.bf16.gmra.mxu2 %vm2905_vm15, %v2496_v44  ;;  %1879 = vmatmul.msk.bf16.gmra.mxu0 %vm2905_vm15, %v2476_v29  ;;  %v1020_v29 = vadd.f32 %v2597_v15, %v2506_v54  ;;  %v2071_v54 = vld [vmem:[%s2887_s16 + $0x50] sm:$0xff]  ;;  %v2070_v15 = vld [vmem:[%s2887_s16 + $0x48] sm:$0xff] }
 0x7e8   :  { %1162 = vmatpush.bf16.msra.mxu1 %v2071_v54 }
 0x7ec   :  { %1163 = vmatpush.bf16.msra.mxu1 %v2070_v15 }
 0x7f0   :  { %1164 = vmatpush.bf16.msra.mxu1 %v2069_v17 }
 0x7f4   :  { %1165 = vmatpush.bf16.msra.mxu1 %v2068_v5 }
 0x7f8   :  { %1166 = vmatpush.bf16.msra.mxu1 %v2067_v6 }
 0x854   :  { %v1056_v10 = vpop.f32.mrf.mxu0 }
 0x855   :  { %1071 = vrot.lane.b32.xlu2 %v1056_v10, %s2205_s2 }
 0x85a   :  { %v1038_v19 = vpop.f32.mrf.mxu2 }
 0x85b   :  { %1065 = vst.msk [vmem:[#allocation2] sm:$0xff] %vm268_vm5, %v1038_v19 }
 0x85c   :  { %v1058_v56 = vpop.f32.mrf.mxu0 }
 0x85d   :  { %1086 = vrot.lane.b32.xlu2 %v1018_v2, %s2204_s14  ;;  %1073 = vrot.lane.b32.xlu1 %v1058_v56, %s2205_s2  ;;  %v2074_v2 = vld [vmem:[%s2888_s17 + $0x28] sm:$0xff] }
 0x85e   :  { %1309 = vmatpush.bf16.msra.mxu3 %v2074_v2 }
 0x862   :  { %v1040_v26 = vpop.f32.mrf.mxu2 }
 0x863   :  { %1066 = vst.msk [vmem:[#allocation2 + $0x8] sm:$0xff] %vm268_vm5, %v1040_v26  ;;  %v2073_v26 = vld [vmem:[%s2888_s17 + $0x20] sm:$0xff]  ;;  %s1873_s17 = sld [smem:[#allocation5 + $0x5]] }
 0x864   :  { %v1061_v44 = vpop.f32.mrf.mxu0  ;;  %1310 = vmatpush.bf16.msra.mxu3 %v2073_v26 }
 0x865   :  { %1088 = vrot.lane.b32.xlu2 %v1019_v36, %s2204_s14  ;;  %1090 = vrot.lane.b32.xlu1 %v1020_v29, %s2204_s14  ;;  %s2210_s14 = smov [#allocation8]  }
 0x866   :  { %s1676_s28 = sshll.u32 %s2210_s14, 4  ;;  %s1677_s28 = int_to_ptr.vmem [resolvable:$true] %s1676_s28 }
 0x86a   :  { %v1043_v51 = vpop.f32.mrf.mxu2 }
 0x86b   :  { %1067 = vst.msk [vmem:[#allocation2 + $0x10] sm:$0xff] %vm268_vm5, %v1043_v51 }
 0x86c   :  { %v1063_v18 = vpop.f32.mrf.mxu0 }
 0x86d   :  { %1075 = vrot.lane.b32.xlu2 %v1061_v44, %s2205_s2 }
 0x872   :  { %v1045_v3 = vpop.f32.mrf.mxu2 }
 0x8af   :  { %v1072_v4 = vpop.permute.xlu2 %1071 }
 0x8b0   :  { %1080 = vst.msk [vmem:[#allocation2] sm:$0xff] %vm567_vm7, %v1072_v4 }
 0x8b7   :  { %v1087_v7 = vpop.permute.xlu2 %1086 }
 0x8b8   :  { %1095 = vst.msk [vmem:[#allocation2] sm:$0xff] %vm583_vm8, %v1087_v7 }
 0x8bf   :  { %v1089_v8 = vpop.permute.xlu2 %1088  ;;  %v1098_v14 = vld [vmem:[#allocation2] sm:$0xff] }
 0x8c7   :  { %v1076_v62 = vpop.permute.xlu2 %1075 }
 0x8c8   :  { %1082 = vst.msk [vmem:[#allocation2 + $0x10] sm:$0xff] %vm567_vm7, %v1076_v62 }
 0x8cf   :  { %v1074_v12 = vpop.permute.xlu1 %1073 }
 0x8d0   :  { %1081 = vst.msk [vmem:[#allocation2 + $0x8] sm:$0xff] %vm567_vm7, %v1074_v12  ;;  %v1243_v12 = vperm.slane %v2722_v23, 1 }
 0x8d1   :  { %1096 = vst.msk [vmem:[#allocation2 + $0x8] sm:$0xff] %vm583_vm8, %v1089_v8 }
 0x8d7   :  { %v1091_v13 = vpop.permute.xlu1 %1090 }
 0x8d8   :  { %1097 = vst.msk [vmem:[#allocation2 + $0x10] sm:$0xff] %vm583_vm8, %v1091_v13  ;;  %v1099_v16 = vld [vmem:[#allocation2 + $0x8] sm:$0xff] }
 0x8d9   :  { %v1114_v9 = vpack.c.bf16 %v1099_v16, %v1098_v14 }
 0x8db   :  { %1916 = vmatmul.msk.bf16.vlgmr.msra.gmra.mxu1 %vm2927_vm13, %v1114_v9 }
 0x8df   :  { %v1100_v20 = vld [vmem:[#allocation2 + $0x10] sm:$0xff] }
 0x8e0   :  { %v1115_v21 = vpack.c.bf16 %v1100_v20, %v1100_v20  ;;  %v1247_v20 = vperm.slane %v2722_v23, 2 }
 0x8eb   :  { %1917 = vmatmul.msk.bf16.gmra.mxu1 %vm2928_vm3, %v1115_v21 }
 0x958   :  { %v1168_v28 = vpop.f32.mrf.mxu1 }
 0x959   :  { %v1169_v30 = vadd.f32 %v1168_v28, %v1116_v25 }
 0x95b   :  { %v1177_v31 = vsel %vm666_vm10, %v1169_v30, 0.0 }
 0x95c   :  { %1178 = vadd.xlane.f32.xlu2 %v1177_v31 }
 0x960   :  { %v1170_v32 = vpop.f32.mrf.mxu1 }
 0x961   :  { %v1171_v33 = vadd.f32 %v1170_v32, %v1116_v25 }
 0x963   :  { %v1180_v34 = vsel %vm666_vm10, %v1171_v33, 0.0 }
 0x964   :  { %1181 = vadd.xlane.f32.xlu1 %v1180_v34 }
 0x968   :  { %v1173_v35 = vpop.f32.mrf.mxu1 }
 0x969   :  { %v1174_v37 = vadd.f32 %v1173_v35, %v1116_v25  ;;  %v1254_v35 = vstv %s1873_s17 }
 0x96b   :  { %v1183_v38 = vsel %vm666_vm10, %v1174_v37, 0.0 }
 0x96c   :  { %1184 = vadd.xlane.f32.xlu0 %v1183_v38 }
 0x970   :  { %v1175_v39 = vpop.f32.mrf.mxu1 }
 0x9cf   :  { %v1179_v40 = vpop.xlane.xlu2 %1178 }
 0x9d0   :  { %v1186_v41 = vmul.f32 %v1179_v40, %v2557_v46 }
 0x9d2   :  { %v1189_v42 = vsub.f32 %v1169_v30, %v1186_v41 }
 0x9d4   :  { %v1192_v43 = vmul.f32 %v1189_v42, %v1189_v42 }
 0x9d6   :  { %v1195_v45 = vsel %vm666_vm10, %v1192_v43, 0.0 }
 0x9d7   :  { %v1182_v47 = vpop.xlane.xlu1 %1181  ;;  %1196 = vadd.xlane.f32.xlu0 %v1195_v45 }
 0x9d8   :  { %v1187_v48 = vmul.f32 %v1182_v47, %v2557_v46 }
 0x9da   :  { %v1190_v50 = vsub.f32 %v1171_v33, %v1187_v48 }
 0x9dc   :  { %v1193_v52 = vmul.f32 %v1190_v50, %v1190_v50 }
 0x9de   :  { %v1198_v49 = vsel %vm666_vm10, %v1193_v52, 0.0 }
 0x9df   :  { %1199 = vadd.xlane.f32.xlu0 %v1198_v49  ;;  %v1185_v53 = vpop.xlane.xlu0 %1184 }
 0x9e0   :  { %v1188_v55 = vmul.f32 %v1185_v53, %v2557_v46 }
 0x9e2   :  { %v2733_v58 = vsub.f32 %v1174_v37, %v1188_v55 }
 0x9e4   :  { %v1194_v60 = vmul.f32 %v2733_v58, %v2733_v58 }
 0x9e6   :  { %v1201_v61 = vsel %vm666_vm10, %v1194_v60, 0.0 }
 0x9e7   :  { %1202 = vadd.xlane.f32.xlu0 %v1201_v61 }
 0xa4a   :  { %v1197_v10 = vpop.xlane.xlu0 %1196 }
 0xa4b   :  { %v1204_v19 = vmul.f32 %v1197_v10, %v2557_v46 }
 0xa4d   :  { %v1207_v56 = vadd.f32 1e-05, %v1204_v19 }
 0xa4f   :  { %2123 = vrsqrt.f32 %v1207_v56  ;;  %vm1216_vm9 = vweird.f32 %v1207_v56 }
 0xa52   :  { %v1200_v36 = vpop.xlane.xlu0 %1199 }
 0xa53   :  { %v1205_v29 = vmul.f32 %v1200_v36, %v2557_v46 }
 0xa55   :  { %v2124_v44 = vpop.eup %2123  ;;  %v1208_v51 = vadd.f32 1e-05, %v1205_v29 }
 0xa56   :  { %v1211_v18 = vmul.f32 %v2124_v44, %v1207_v56  ;;  %vm1217_vm8 = vweird.f32 %v2124_v44 }
 0xa57   :  { %2125 = vrsqrt.f32 %v1208_v51  ;;  %vm1218_vm4 = vmor %vm1216_vm9, %vm1217_vm8  ;;  %vm1226_vm2 = vweird.f32 %v1208_v51 }
 0xa58   :  { %v1212_v3 = vmul.f32 %v2124_v44, %v1211_v18  ;;  %v2133_v18 = vld [vmem:[%s2886_s15] sm:$0x3] }
 0xa5a   :  { %v1213_v57 = vmul.f32 0.5, %v1212_v3  ;;  %v1203_v54 = vpop.xlane.xlu0 %1202  ;;  %v412_v3 = vperm.slane %v2133_v18, 1 }
 0xa5b   :  { %v1206_v15 = vmul.f32 %v1203_v54, %v2557_v46  ;;  %v2080_v54 = vld [vmem:[%s2889_s18 + $0x38] sm:$0xff] }
 0xa5c   :  { %v1214_v17 = vsub.f32 1.5, %v1213_v57  ;;  %v438_v57 = vadd.f32 %v2523_v1, %v412_v3  ;;  %1396 = vmatpush.bf16.msra.mxu0 %v2080_v54  ;;  %v2077_v1 = vld [vmem:[%s2889_s18 + $0x20] sm:$0xff] }
 0xa5d   :  { %v2126_v4 = vpop.eup %2125  ;;  %v1209_v5 = vadd.f32 1e-05, %v1206_v15  ;;  %v2078_v15 = vld [vmem:[%s2889_s18 + $0x28] sm:$0xff] }
 0xa5e   :  { %v1215_v6 = vmul.f32 %v2124_v44, %v1214_v17  ;;  %v1221_v7 = vmul.f32 %v2126_v4, %v1208_v51  ;;  %vm1227_vm1 = vweird.f32 %v2126_v4 }
 0xa5f   :  { %2127 = vrsqrt.f32 %v1209_v5  ;;  %vm1228_vm13 = vmor %vm1226_vm2, %vm1227_vm1  ;;  %vm1236_vm8 = vweird.f32 %v1209_v5 }
 0xa60   :  { %v1219_v8 = vsel %vm1218_vm4, %v2124_v44, %v1215_v6  ;;  %v1222_v62 = vmul.f32 %v2126_v4, %v1221_v7 }
 0xa61   :  { %v1240_v13 = vmul.f32 %v1219_v8, %v1189_v42  ;;  %v1364_v8 = vperm.slane %v2722_v23, 4 }
 0xa62   :  { %v1223_v14 = vmul.f32 0.5, %v1222_v62 }
 0xa63   :  { %v1244_v21 = vmul.f32 %v1243_v12, %v1240_v13 }
 0xa64   :  { %v1224_v16 = vsub.f32 1.5, %v1223_v14 }
 0xa65   :  { %v2128_v9 = vpop.eup %2127  ;;  %v1248_v32 = vadd.f32 %v1247_v20, %v1244_v21 }
 0xa66   :  { %v1225_v25 = vmul.f32 %v2126_v4, %v1224_v16  ;;  %v1231_v28 = vmul.f32 %v2128_v9, %v1209_v5  ;;  %vm1237_vm3 = vweird.f32 %v2128_v9 }
 0xa67   :  { %v1255_v40 = vmul.f32 %v1254_v35, %v1248_v32  ;;  %vm1251_vm9 = vcmp.gt.f32.partialorder %v1248_v32, 0.0  ;;  %vm1238_vm4 = vmor %vm1236_vm8, %vm1237_vm3 }
 0xa68   :  { %v1229_v30 = vsel %vm1228_vm13, %v2126_v4, %v1225_v25  ;;  %v1232_v31 = vmul.f32 %v2128_v9, %v1231_v28 }
 0xa69   :  { %v1241_v33 = vmul.f32 %v1229_v30, %v1190_v50  ;;  %v1258_v47 = vsel %vm1251_vm9, %v1248_v32, %v1255_v40 }
 0xa6a   :  { %v1233_v34 = vmul.f32 0.5, %v1232_v31 }
 0xa6b   :  { %v1245_v37 = vmul.f32 %v1243_v12, %v1241_v33 }
 0xa6c   :  { %v1234_v38 = vsub.f32 1.5, %v1233_v34 }
 0xa6d   :  { %v1249_v39 = vadd.f32 %v1247_v20, %v1245_v37  ;;  %v2084_v37 = vld [vmem:[%s2890_s19 + $0x38] sm:$0xff] }
 0xa6e   :  { %v1235_v41 = vmul.f32 %v2128_v9, %v1234_v38  ;;  %1505 = vmatpush.bf16.msrb.mxu3 %v2084_v37  ;;  %v2083_v38 = vld [vmem:[%s2890_s19 + $0x30] sm:$0xff] }
 0xa6f   :  { %vm1252_vm15 = vcmp.gt.f32.partialorder %v1249_v39, 0.0  ;;  %v1256_v42 = vmul.f32 %v1254_v35, %v1249_v39 }
 0xa70   :  { %v1239_v43 = vsel %vm1238_vm4, %v2128_v9, %v1235_v41  ;;  %v2082_v41 = vld [vmem:[%s2890_s19 + $0x28] sm:$0xff] }
 0xa71   :  { %v1242_v45 = vmul.f32 %v1239_v43, %v2733_v58  ;;  %v1259_v48 = vsel %vm1252_vm15, %v1249_v39, %v1256_v42  ;;  %v2081_v43 = vld [vmem:[%s2890_s19 + $0x20] sm:$0xff]  ;;  %s1874_s19 = sld [smem:[#allocation5 + $0x6]] }
 0xa72   :  { %v1270_v52 = vpack.c.bf16 %v1259_v48, %v1258_v47  ;;  %1506 = vmatpush.bf16.msrb.mxu3 %v2083_v38  ;;  %v2015_v38 = vld [vmem:[%s2893_s22] sm:$0xf] }
 0xa73   :  { %v1246_v50 = vmul.f32 %v1243_v12, %v1242_v45 }
 0xa74   :  { %1942 = vmatmul.msk.bf16.vlgmr.msra.gmra.mxu3 %vm666_vm10, %v1270_v52 }
 0xa75   :  { %v1250_v49 = vadd.f32 %v1247_v20, %v1246_v50 }
 0xa76   :  { %1507 = vmatpush.bf16.msrb.mxu3 %v2082_v41 }
 0xa77   :  { %v1257_v53 = vmul.f32 %v1254_v35, %v1250_v49  ;;  %vm1253_vm1 = vcmp.gt.f32.partialorder %v1250_v49, 0.0  ;;  %v1458_v18 = vstv %s1874_s19 }
 0xa79   :  { %v1260_v55 = vsel %vm1253_vm1, %v1250_v49, %v1257_v53  ;;  %vm2932_vm1 = vcmask 97280  }
 0xa7a   :  { %v1271_v60 = vpack.c.bf16 %v1260_v55, %v1260_v55  ;;  %1508 = vmatpush.bf16.msrb.mxu3 %v2081_v43 }
 0xa84   :  { %1943 = vmatmul.msk.bf16.gmra.mxu3 %vm666_vm10, %v1271_v60 }
 0xaf7   :  { %v1312_v61 = vpop.f32.mrf.mxu3 }
 0xaf8   :  { %v1313_v26 = vadd.f32 %v1312_v61, %v1272_v24 }
 0xaff   :  { %v1314_v0 = vpop.f32.mrf.mxu3 }
 0xb00   :  { %v1315_v2 = vadd.f32 %v1314_v0, %v1272_v24 }
 0xb02   :  { %v1321_v36 = vpack.c.bf16 %v1315_v2, %v1313_v26 }
 0xb07   :  { %v1317_v10 = vpop.f32.mrf.mxu3 }
 0xb08   :  { %v1318_v19 = vadd.f32 %v1317_v10, %v1272_v24 }
 0xb0a   :  { %v1322_v58 = vpack.c.bf16 %v1318_v19, %v1318_v19  ;;  %v1450_v19 = vperm.slane %v2722_v23, 5 }
 0xb0c   :  { %v1324_v56 = vsel %vm211_vm0, %v1322_v58, 0  ;;  %vm2929_vm0 = vcmask 519168  }
 0xb0d   :  { %1332 = vmatpush.bf16.msra.mxu2 %v1324_v56  ;;  %vm2930_vm15 = vmmov %vm2929_vm0  ;;  %v1453_v56 = vperm.slane %v2722_v23, 6 }
 0xb0f   :  { %v1319_v29 = vpop.f32.mrf.mxu3 }
 0xb11   :  { %1333 = vmatpush.bf16.msra.mxu2 %v1321_v36 }
 0xb14   :  { %1944 = vmatmul.msk.bf16.vlgmr.msra.gmra.mxu2 %vm819_vm6, %v2611_v27  ;;  %v2079_v27 = vld [vmem:[%s2889_s18 + $0x30] sm:$0xff] }
 0xb15   :  { %1397 = vmatpush.bf16.msra.mxu0 %v2079_v27 }
 0xb19   :  { %1398 = vmatpush.bf16.msra.mxu0 %v2078_v15 }
 0xb1d   :  { %1399 = vmatpush.bf16.msra.mxu0 %v2077_v1 }
 0xb97   :  { %v1335_v44 = vpop.f32.mrf.mxu2 }
 0xb98   :  { %1344 = vrot.lane.b32.xlu0 %v1335_v44, %s2205_s2 }
 0xb9f   :  { %v1337_v51 = vpop.f32.mrf.mxu2 }
 0xba0   :  { %1346 = vrot.lane.b32.xlu2 %v1337_v51, %s2205_s2 }
 0xba8   :  { %1540 = vrot.lane.b32.xlu2 %v438_v57, %s2205_s2 }
 0xbfa   :  { %v1347_v17 = vpop.permute.xlu2 %1346 }
 0xbfb   :  { %1351 = vst.msk [vmem:[#allocation3 + $0x8] sm:$0xf] %vm852_vm12, %v1347_v17 }
 0xc02   :  { %v1353_v6 = vld [vmem:[#allocation3 + $0x8] sm:$0xf] }
 0xc0a   :  { %v1345_v4 = vpop.permute.xlu0 %1344 }
 0xc0b   :  { %1350 = vst.msk [vmem:[#allocation3] sm:$0xff] %vm567_vm7, %v1345_v4  ;;  %v2088_v4 = vld [vmem:[%s2892_s21 + $0x18] sm:$0xff] }
 0xc0c   :  { %1590 = vmatpush.bf16.msrb.mxu1 %v2088_v4 }
 0xc12   :  { %v1352_v5 = vld [vmem:[#allocation3] sm:$0xff] }
 0xc13   :  { %v1363_v7 = vpack.c.bf16 %v1353_v6, %v1352_v5  ;;  %v1473_v5 = vperm.slane %v2722_v23, 7 }
 0xc15   :  { %1969 = vmatmul.msk.bf16.vlgmr.msra.gmra.mxu0 %vm666_vm10, %v1363_v7 }
 0xc92   :  { %v1401_v62 = vpop.f32.mrf.mxu0 }
 0xc93   :  { %v1402_v12 = vadd.f32 %v1401_v62, %v1364_v8  ;;  %v2109_v62 = vld [vmem:[%s2931_s11] ss:$0 sm:$0xff] }
 0xc94   :  { %vm492_vm4 = vcmp.eq.s32.totalorder %v2590_v11, %v2109_v62  ;;  %v2086_v11 = vld [vmem:[%s2892_s21 + $0x8] sm:$0xff] }
 0xc95   :  { %v1406_v13 = vsel %vm666_vm10, %v1402_v12, 0.0 }
 0xc96   :  { %1407 = vadd.xlane.f32.xlu1 %v1406_v13 }
 0xc9a   :  { %v1403_v14 = vpop.f32.mrf.mxu0 }
 0xc9b   :  { %v1404_v16 = vadd.f32 %v1403_v14, %v1364_v8 }
 0xc9d   :  { %v1409_v9 = vsel %vm2929_vm0, %v1404_v16, 0.0 }
 0xc9e   :  { %1410 = vadd.xlane.f32.xlu1 %v1409_v9 }
 0xd09   :  { %v1408_v20 = vpop.xlane.xlu1 %1407 }
 0xd0a   :  { %v1412_v21 = vmul.f32 %v1408_v20, %v2557_v46  ;;  %v2087_v20 = vld [vmem:[%s2892_s21 + $0x10] sm:$0xff] }
 0xd0b   :  { %1591 = vmatpush.bf16.msrb.mxu1 %v2087_v20 }
 0xd0c   :  { %v1414_v25 = vsub.f32 %v1402_v12, %v1412_v21  ;;  %v1541_v21 = vpop.permute.xlu2 %1540 }
 0xd0e   :  { %v1416_v28 = vmul.f32 %v1414_v25, %v1414_v25 }
 0xd0f   :  { %1592 = vmatpush.bf16.msrb.mxu1 %v2086_v11 }
 0xd10   :  { %v1418_v30 = vsel %vm666_vm10, %v1416_v28, 0.0 }
 0xd11   :  { %1419 = vadd.xlane.f32.xlu0 %v1418_v30  ;;  %v1411_v31 = vpop.xlane.xlu1 %1410 }
 0xd12   :  { %v1413_v32 = vmul.f32 %v1411_v31, %v2557_v46  ;;  %v2023_v31 = vld [vmem:[%s2893_s22 + $0x10] sm:$0xf] }
 0xd14   :  { %v1415_v33 = vsub.f32 %v1404_v16, %v1413_v32  ;;  %v493_v16 = vsel %vm492_vm4, 1.0, %v2203_v22  ;;  %v2085_v22 = vld [vmem:[%s2892_s21] sm:$0xff]  ;;  %v2092_v32 = vld [vmem:[%s2893_s22 + $0x14] sm:$0xf0] }
 0xd15   :  { %1593 = vmatpush.bf16.msrb.mxu1 %v2085_v22 }
 0xd16   :  { %v1417_v34 = vmul.f32 %v1415_v33, %v1415_v33 }
 0xd18   :  { %v1421_v35 = vsel %vm2930_vm15, %v1417_v34, 0.0  ;;  %v2024_v34 = vor.u32 %v2092_v32, %v2023_v31 }
 0xd19   :  { %1422 = vadd.xlane.f32.xlu1 %v1421_v35  ;;  %v2025_v35 = vld [vmem:[%s2893_s22 + $0x18] sm:$0xf0] }
 0xd1a   :  { %1642 = vmatpush.bf16.msrb.mxu0 %v2024_v34 }
 0xd84   :  { %v1420_v39 = vpop.xlane.xlu0 %1419 }
 0xd85   :  { %v1424_v40 = vmul.f32 %v1420_v39, %v2557_v46  ;;  %v2090_v39 = vld [vmem:[%s2893_s22 + $0x4] sm:$0xf0] }
 0xd86   :  { %v2016_v41 = vor.u32 %v2090_v39, %v2015_v38 }
 0xd87   :  { %v1426_v42 = vadd.f32 1e-05, %v1424_v40  ;;  %v2089_v40 = vld [vmem:[%s2893_s22 + $0x4] sm:$0xf] }
 0xd88   :  { %1643 = vmatpush.bf16.msrb.mxu0 %v2016_v41 }
 0xd89   :  { %2129 = vrsqrt.f32 %v1426_v42  ;;  %vm1434_vm6 = vweird.f32 %v1426_v42 }
 0xd8c   :  { %v1423_v45 = vpop.xlane.xlu1 %1422 }
 0xd8d   :  { %v1425_v47 = vmul.f32 %v1423_v45, %v2557_v46  ;;  %v2110_v45 = vld [vmem:[%s2894_s23] ss:$0 sm:$0xff]  ;;  %s2208_s23 = smov 128  }
 0xd8f   :  { %v2130_v48 = vpop.eup %2129  ;;  %v1427_v52 = vadd.f32 1e-05, %v1425_v47 }
 0xd90   :  { %v1429_v50 = vmul.f32 %v2130_v48, %v1426_v42  ;;  %vm1435_vm7 = vweird.f32 %v2130_v48  ;;  %v2017_v42 = vld [vmem:[%s2893_s22 + $0x8] sm:$0xf0] }
 0xd91   :  { %2131 = vrsqrt.f32 %v1427_v52  ;;  %vm1436_vm12 = vmor %vm1434_vm6, %vm1435_vm7  ;;  %vm1444_vm13 = vweird.f32 %v1427_v52  ;;  %v2020_v43 = vor.u32 %v2089_v40, %v2017_v42 }
 0xd92   :  { %v1430_v49 = vmul.f32 %v2130_v48, %v1429_v50 }
 0xd94   :  { %v1431_v53 = vmul.f32 0.5, %v1430_v49 }
 0xd96   :  { %v1432_v55 = vsub.f32 1.5, %v1431_v53 }
 0xd97   :  { %v2132_v60 = vpop.eup %2131 }
 0xd98   :  { %v1433_v61 = vmul.f32 %v2130_v48, %v1432_v55  ;;  %v1439_v0 = vmul.f32 %v2132_v60, %v1427_v52  ;;  %vm1445_vm2 = vweird.f32 %v2132_v60 }
 0xd99   :  { %vm1446_vm3 = vmor %vm1444_vm13, %vm1445_vm2 }
 0xd9a   :  { %v1437_v24 = vsel %vm1436_vm12, %v2130_v48, %v1433_v61  ;;  %v1440_v10 = vmul.f32 %v2132_v60, %v1439_v0 }
 0xd9b   :  { %v1448_v58 = vmul.f32 %v1437_v24, %v1414_v25 }
 0xd9c   :  { %v1441_v2 = vmul.f32 0.5, %v1440_v10 }
 0xd9d   :  { %v1451_v26 = vmul.f32 %v1450_v19, %v1448_v58 }
 0xd9e   :  { %v1442_v46 = vsub.f32 1.5, %v1441_v2 }
 0xd9f   :  { %v1454_v44 = vadd.f32 %v1453_v56, %v1451_v26 }
 0xda0   :  { %v1443_v36 = vmul.f32 %v2132_v60, %v1442_v46 }
 0xda1   :  { %v1459_v54 = vmul.f32 %v1458_v18, %v1454_v44  ;;  %vm1456_vm8 = vcmp.gt.f32.partialorder %v1454_v44, 0.0 }
 0xda2   :  { %v1447_v29 = vsel %vm1446_vm3, %v2132_v60, %v1443_v36  ;;  %v1607_v60 = vld [vmem:[%s2895_s24] sm:$0x3] }
 0xda3   :  { %v1449_v51 = vmul.f32 %v1447_v29, %v1415_v33  ;;  %v1461_v15 = vsel %vm1456_vm8, %v1454_v44, %v1459_v54  ;;  %v2091_v33 = vld [vmem:[%s2893_s22 + $0x14] sm:$0xf]  ;;  %s1686_s22 = sshll.u32 %s2207_s29, 4  ;;  %v1610_v61 = vperm.slane %v1607_v60, 1  ;;  %v1609_v0 = vperm.slane %v1607_v60, 0  ;;  %s1687_s22 = int_to_ptr.vmem [resolvable:$true] %s1686_s22 }
 0xda4   :  { %v2028_v37 = vor.u32 %v2091_v33, %v2025_v35 }
 0xda5   :  { %v1452_v3 = vmul.f32 %v1450_v19, %v1449_v51 }
 0xda6   :  { %1655 = vmatpush.bf16.msra.mxu3 %v2028_v37 }
 0xda7   :  { %v1455_v57 = vadd.f32 %v1453_v56, %v1452_v3 }
 0xda9   :  { %vm1457_vm9 = vcmp.gt.f32.partialorder %v1455_v57, 0.0  ;;  %v1460_v27 = vmul.f32 %v1458_v18, %v1455_v57 }
 0xdaa   :  { %1656 = vmatpush.bf16.msra.mxu3 %v2020_v43 }
 0xdab   :  { %v1462_v1 = vsel %vm1457_vm9, %v1455_v57, %v1460_v27 }
 0xdac   :  { %v1472_v17 = vpack.c.bf16 %v1462_v1, %v1461_v15 }
 0xdae   :  { %1994 = vmatmul.msk.bf16.vlgmr.msrb.gmra.mxu3 %vm666_vm10, %v1472_v17 }
 0xe31   :  { %v1510_v6 = vpop.f32.mrf.mxu3 }
 0xe32   :  { %v1511_v7 = vadd.f32 %v1510_v6, %v1473_v5 }
 0xe34   :  { %v1515_v8 = vadd.f32 %v1511_v7, %v2658_v59  ;;  %v494_v59 = vpack.c.bf16 %v493_v16, %v493_v16 }
 0xe36   :  { %1669 = vst.msk [vmem:[#allocation9] sm:$0xff] %vm268_vm5, %v1515_v8 }
 0xe39   :  { %v1512_v12 = vpop.f32.mrf.mxu3 }
 0xe3a   :  { %v1513_v13 = vadd.f32 %v1512_v12, %v1473_v5 }
 0xe3c   :  { %v1516_v14 = vadd.f32 %v1513_v13, %v2663_v63 }
 0xe3e   :  { %v1517_v9 = vpack.c.bf16 %v1516_v14, %v1515_v8  ;;  %1670 = vst.msk [vmem:[#allocation9 + $0x8] sm:$0xf] %vm841_vm11, %v1516_v14  ;;  %vm1537_vm11 = vcmask 254976  }
 0xe3f   :  { %1694 = dma.vmem_to_hbm [thread:$0]  %s1687_s22, 256, %s1689_s12, [#allocation10], %s2208_s23, %s2208_s23, %s2209_s0  }
 0xe40   :  { %v1522_v23 = vsel %vm506_vm14, %v1517_v9, 0  ;;  %vm1543_vm14 = vcmask 517376  }
 0xe41   :  { %1531 = vmatpush.bf16.msrb.mxu2 %v1522_v23 }
 0xe44   :  { %1995 = vmatmul.msk.bf16.vlgmr.msrb.gmra.mxu2 %vm2932_vm1, %v494_v59 }
 0xec7   :  { %v1533_v63 = vpop.f32.mrf.mxu2 }
 0xec8   :  { %1538 = vst.msk [vmem:[#allocation4] sm:$0x3] %vm1537_vm11, %v1533_v63 }
 0xec9   :  { %1544 = vst.msk [vmem:[#allocation4] sm:$0x3] %vm1543_vm14, %v1541_v21 }
 0xecf   :  { %v1535_v25 = vpop.f32.mrf.mxu2 }
 0xed0   :  { %v1545_v28 = vld [vmem:[#allocation4] sm:$0x3] }
 0xed1   :  { %v1554_v30 = vpack.c.bf16 %v1545_v28, %v1545_v28 }
 0xed3   :  { %2012 = vmatmul.msk.bf16.vlgmr.msrb.gmra.mxu1 %vm666_vm10, %v1554_v30 }
 0xf50   :  { %v1595_v47 = vpop.f32.mrf.mxu1 }
 0xf51   :  { %v1596_v48 = vadd.f32 %v2110_v45, %v1595_v47 }
 0xf53   :  { %vm1599_vm10 = vcmp.gt.f32.partialorder %v1596_v48, 0.0  ;;  %v1600_v52 = vmul.f32 0.01, %v1596_v48 }
 0xf55   :  { %v1601_v50 = vsel %vm1599_vm10, %v1596_v48, %v1600_v52 }
 0xf56   :  { %v1606_v49 = vpack.c.bf16 %v1601_v50, %v1601_v50 }
 0xf58   :  { %v1597_v53 = vpop.f32.mrf.mxu1  ;;  %2029 = vmatmul.msk.bf16.vlgmr.msrb.gmra.mxu0 %vm268_vm5, %v1606_v49  ;;  %2030 = vmatmul.msk.bf16.vlgmr.msra.gmra.mxu3 %vm268_vm5, %v1606_v49  ;;  %vm1665_vm5 = vcmask 1041408  }
 0xfd5   :  { %v1645_v55 = vpop.f32.mrf.mxu0 }
 0xfd6   :  { %v1646_v58 = vadd.f32 %v1645_v55, %v1609_v0 }
 0xfdb   :  { %v1658_v24 = vpop.f32.mrf.mxu3 }
 0xfdc   :  { %v1659_v10 = vadd.f32 %v1658_v24, %v1610_v61 }
 0xfdd   :  { %v1647_v19 = vpop.f32.mrf.mxu0 }
 0xfde   :  { %v1664_v2 = vrot.slane %v1659_v10, 6 }
 0xfe0   :  { %v1666_v46 = vsel %vm1665_vm5, %v1646_v58, %v1664_v2 }
 0xfe1   :  { %1668 = vst [vmem:[#allocation8] sm:$0xf] %v1666_v46 }
 0xfe2   :  { %1681 = dma.vmem_to_hbm [thread:$0]  %s1677_s28, 64, %s1679_s26, [#allocation6]  }
 0xfe3   :  { %v1660_v56 = vpop.f32.mrf.mxu3 }
 0xfe4   :  { %2196 = dma.done.wait [#allocation6], 64  }
 0xfe5   :  { %2197 = vsyncadd [#allocation6], 4294967232 }
 0xfe6   :  { %2198 = dma.done.wait [#allocation10], 256  }
 0xfe7   :  { %2199 = vsyncadd [#allocation10], 4294967040 }
 0xfe8   :  { %1703 = vsyncpa [#allocation6], 1 }
 0xfe9   :  { %1704 = vsyncpa [#allocation10], 1 }
 0xfea   :  { %1705 = vsyncpa [#allocation7], 1 }

</bundles_post_ra>
